<compile_context>
chip_gen: v7x
topology: tpu7x:2x2x1
jax: 0.10.0
libtpu: 0.0.40
codegen_flags: <defaults>
</compile_context>

<pallas_src>
import functools

import jax
import jax.numpy as jnp
from jax.experimental import pallas as pl
from jax.experimental.pallas import tpu as pltpu


def _round_up(n, m):
    return ((n + m - 1) // m) * m


def _pad_axis(x, axis, target):
    n = x.shape[axis]
    if n == target:
        return x
    pads = [(0, 0)] * x.ndim
    pads[axis] = (0, target - n)
    return jnp.pad(x, pads)


def _device_kind():
    try:
        return jax.devices()[0].device_kind.lower()
    except Exception:
        return ""


def _mxu_dim(kind):
    # v2..v5 have 128-wide MXUs; v6e/v7x are 256-wide.
    if any(v in kind for v in ("v2", "v3", "v4", "v5")):
        return 128
    return 256


def _vmem_limit_bytes(kind):
    # v7x has 64 MiB physical VMEM per TensorCore -> keep headroom.
    if "7" in kind:
        return 48 * 1024 * 1024
    return 64 * 1024 * 1024


# ----------------------------------------------------------------------------
# Pallas kernels
# ----------------------------------------------------------------------------
def _backbone_embed_kernel(patch_ref, wconv_ref, bconv_ref, wfc_ref, bfc_ref,
                           hn_ref, acc_ref, *, inv_p, n_pad):
    """Conv2d(3x3, pad=1) as im2col matmul + bias + ReLU, mean-pooled over the
    patch axis P (grid reduction), with fc (BatchNorm1d-eval folded in) and
    L2-normalize fused into the final grid step.  Emits bf16 embeddings.

    patch_ref : [B, TILE_P, CK] bf16   (CK = 9*C, NOT lane-padded in HBM)
    wconv_ref : [CK, Fp] bf16          bconv_ref : [1, Fp] f32
    wfc_ref   : [Fp, Ep] bf16          bfc_ref   : [1, Ep] f32
    hn_ref    : [B, Ep] bf16 output (L2-normalized embedding)
    acc_ref   : [B, Fp] f32 VMEM accumulator (resident across the grid)
    """
    p = pl.program_id(0)

    @pl.when(p == 0)
    def _():
        acc_ref[...] = jnp.zeros_like(acc_ref)

    b, tile_p, ck = patch_ref.shape
    x2d = patch_ref[...].reshape(b * tile_p, ck)             # flat 2-D MXU matmul
    y = jnp.dot(x2d, wconv_ref[...], preferred_element_type=jnp.float32)
    y = jnp.maximum(y + bconv_ref[...], 0.0)                 # bias + ReLU
    acc_ref[...] += y.reshape(b, tile_p, -1).sum(axis=1)

    @pl.when(p == pl.num_programs(0) - 1)
    def _():
        feat = acc_ref[...]
        if n_pad:  # zero-padded patch rows each contributed ReLU(bconv)
            feat = feat - float(n_pad) * jnp.maximum(bconv_ref[...], 0.0)
        feat = feat * inv_p                                  # mean over true P
        # TODO(synk): Dropout is identity in eval mode; no RNG mask applied.
        h = jnp.dot(feat.astype(jnp.bfloat16), wfc_ref[...],
                    preferred_element_type=jnp.float32) + bfc_ref[...]
        ssq = jnp.sum(h * h, axis=-1, keepdims=True)
        # x * rsqrt(max(||x||^2, 1e-24)) == x / max(||x||, 1e-12)  (F.normalize)
        hn = h * jax.lax.rsqrt(jnp.maximum(ssq, 1e-24))
        hn_ref[...] = hn.astype(hn_ref.dtype)                # bf16 out, no wrapper cast


def _cosface_kernel(tgt_ref, hn_ref, wn_ref, logits_ref, *, s, m, tile_l):
    """CosFace margin logits for one TILE_L-wide tile of classes.

    tgt_ref    : [B, 1] int32 (VMEM)       hn_ref : [B, Ep] bf16
    wn_ref     : [TILE_L, Ep] bf16 (pre-normalized class centroids)
    logits_ref : [B, TILE_L] f32
    """
    li = pl.program_id(0)
    cos = jax.lax.dot_general(                               # hn @ wn_tile.T
        hn_ref[...], wn_ref[...],
        dimension_numbers=(((1,), (1,)), ((), ())),
        preferred_element_type=jnp.float32)
    bsz = cos.shape[0]
    lane = jax.lax.broadcasted_iota(jnp.int32, (bsz, tile_l), 1) + li * tile_l
    onehot = (lane == tgt_ref[...]).astype(jnp.float32)      # one vectorized compare
    logits_ref[...] = (cos - m * onehot) * s


# ----------------------------------------------------------------------------
# Wrappers around pallas_call
# ----------------------------------------------------------------------------
def backbone_embed(patches_bf16, wconv, bconv, wfc, bfc, *, p_true, n_pad,
                   tile_p, vmem_limit):
    B, P_pad, CK = patches_bf16.shape
    Fp = wconv.shape[1]
    Ep = wfc.shape[1]
    grid = (P_pad // tile_p,)
    kernel = functools.partial(_backbone_embed_kernel,
                               inv_p=1.0 / p_true, n_pad=n_pad)
    cost = pl.CostEstimate(
        flops=2 * B * P_pad * CK * Fp + 2 * B * Fp * Ep,
        transcendentals=B,
        bytes_accessed=patches_bf16.size * 2 + wconv.size * 2 + bconv.size * 4
        + wfc.size * 2 + bfc.size * 4 + B * Ep * 2)
    return pl.pallas_call(
        kernel,
        out_shape=jax.ShapeDtypeStruct((B, Ep), jnp.bfloat16),
        grid_spec=pltpu.PrefetchScalarGridSpec(
            num_scalar_prefetch=0, grid=grid,
            in_specs=[
                pl.BlockSpec((B, tile_p, CK), lambda p: (0, p, 0)),
                pl.BlockSpec((CK, Fp), lambda p: (0, 0)),
                pl.BlockSpec((1, Fp), lambda p: (0, 0)),
                pl.BlockSpec((Fp, Ep), lambda p: (0, 0)),
                pl.BlockSpec((1, Ep), lambda p: (0, 0)),
            ],
            out_specs=pl.BlockSpec((B, Ep), lambda p: (0, 0)),
            scratch_shapes=[pltpu.VMEM((B, Fp), jnp.float32)]),
        compiler_params=pltpu.CompilerParams(
            dimension_semantics=("arbitrary",),              # reduction axis
            vmem_limit_bytes=vmem_limit),
        cost_estimate=cost,
    )(patches_bf16, wconv, bconv, wfc, bfc)


def cosface_logits(hn_bf16, wn, targets, *, s, m, tile_l, vmem_limit):
    B, Ep = hn_bf16.shape
    Lp = wn.shape[0]
    assert Lp % tile_l == 0
    grid = (Lp // tile_l,)
    kernel = functools.partial(_cosface_kernel, s=s, m=m, tile_l=tile_l)
    cost = pl.CostEstimate(
        flops=2 * B * Ep * Lp, transcendentals=0,
        bytes_accessed=hn_bf16.size * 2 + wn.size * 2 + B * Lp * 4 + B * 4)
    tgt2d = targets.astype(jnp.int32).reshape(B, 1)
    return pl.pallas_call(
        kernel,
        out_shape=jax.ShapeDtypeStruct((B, Lp), jnp.float32),
        grid_spec=pltpu.PrefetchScalarGridSpec(
            num_scalar_prefetch=0, grid=grid,
            in_specs=[
                pl.BlockSpec((B, 1), lambda l: (0, 0)),
                pl.BlockSpec((B, Ep), lambda l: (0, 0)),
                pl.BlockSpec((tile_l, Ep), lambda l: (l, 0)),
            ],
            out_specs=pl.BlockSpec((B, tile_l), lambda l: (0, l))),
        compiler_params=pltpu.CompilerParams(
            dimension_semantics=("parallel",),               # 2 TCs on v7x
            vmem_limit_bytes=vmem_limit),
        cost_estimate=cost,
    )(tgt2d, hn_bf16, wn)


# ----------------------------------------------------------------------------
# Glue (plain JAX): im2col, parameter construction / preparation, forward
# ----------------------------------------------------------------------------
def im2col_3x3(x_nhwc):
    # TODO(synk): im2col is still a 9x HBM expansion; a production backbone
    # kernel would do the 3x3 conv in-kernel from NHWC tiles (+halo) as nine
    # shifted matmuls, or use lax.conv_general_dilated outside Pallas.
    B, H, W, C = x_nhwc.shape
    xp = jnp.pad(x_nhwc, ((0, 0), (1, 1), (1, 1), (0, 0)))
    cols = []
    for di in range(3):
        for dj in range(3):
            cols.append(xp[:, di:di + H, dj:dj + W, :])
    p = jnp.stack(cols, axis=3)            # [B, H, W, 9, C]
    return p.reshape(B, H * W, 9 * C)      # index = (di*3+dj)*C + c


def make_params(key, c_in, init_features, emb_size, labels_num):
    ks = jax.random.split(key, 8)
    wconv = (jax.random.normal(ks[0], (3, 3, c_in, init_features), jnp.float32)
             * 0.1).reshape(9 * c_in, init_features)
    bconv = jax.random.normal(ks[1], (1, init_features), jnp.float32) * 0.05
    xav = (2.0 / (init_features + emb_size)) ** 0.5
    wfc = jax.random.normal(ks[2], (init_features, emb_size), jnp.float32) * xav
    bfc = jnp.zeros((1, emb_size), jnp.float32)
    gamma = 1.0 + 0.1 * jax.random.normal(ks[3], (1, emb_size), jnp.float32)
    beta = 0.1 * jax.random.normal(ks[4], (1, emb_size), jnp.float32)
    rmean = 0.05 * jax.random.normal(ks[5], (1, emb_size), jnp.float32)
    rvar = jnp.abs(1.0 + 0.1 * jax.random.normal(ks[6], (1, emb_size), jnp.float32))
    wcos = jax.random.normal(ks[7], (labels_num, emb_size), jnp.float32) * 0.1
    return dict(wconv=wconv, bconv=bconv, wfc=wfc, bfc=bfc, gamma=gamma,
                beta=beta, rmean=rmean, rvar=rvar, wcos=wcos)


def prepare_params(params, *, bn_eps=1e-5, mxu_dim=None, even_l_grid=None):
    """Host-side one-time prep: fold BN into fc, pre-normalize centroids,
    pad feature/embedding/label dims to the MXU width of the local chip,
    cast matmul operands to bf16.  CK (im2col contraction) is NOT padded."""
    kind = _device_kind()
    if mxu_dim is None:
        mxu_dim = _mxu_dim(kind)
    if even_l_grid is None:
        even_l_grid = "7" in kind            # v7x: even split over 2 TCs

    F_, E = params["wfc"].shape
    L = params["wcos"].shape[0]
    Fp, Ep = _round_up(F_, mxu_dim), _round_up(E, mxu_dim)
    tile_l = mxu_dim
    Lp = _round_up(L, tile_l)
    if even_l_grid and (Lp // tile_l) % 2 == 1:
        Lp += tile_l

    # Fold BatchNorm1d (eval) into fc:  h = feat @ (wfc*scale) + ((bfc-mean)*scale+beta)
    scale = params["gamma"] * jax.lax.rsqrt(params["rvar"] + bn_eps)     # [1,E]
    wfc = params["wfc"] * scale
    bfc = (params["bfc"] - params["rmean"]) * scale + params["beta"]

    # Pre-normalize CosFace class centroids (F.normalize(weight)).
    wcos = params["wcos"]
    wn = wcos * jax.lax.rsqrt(
        jnp.maximum(jnp.sum(wcos * wcos, axis=-1, keepdims=True), 1e-24))

    wconv = _pad_axis(params["wconv"], 1, Fp)        # CK dim left unpadded
    bconv = _pad_axis(params["bconv"], 1, Fp)
    wfc = _pad_axis(_pad_axis(wfc, 0, Fp), 1, Ep)
    bfc = _pad_axis(bfc, 1, Ep)
    wn = _pad_axis(_pad_axis(wn, 0, Lp), 1, Ep)

    return dict(
        wconv=wconv.astype(jnp.bfloat16), bconv=bconv.astype(jnp.float32),
        wfc=wfc.astype(jnp.bfloat16), bfc=bfc.astype(jnp.float32),
        wn=wn.astype(jnp.bfloat16),
        f_p=Fp, e_p=Ep, l_p=Lp, tile_l=tile_l,
        emb_size=E, labels_num=L,
        vmem_limit=_vmem_limit_bytes(kind))


def cosface_encoder_forward(prep, x_nchw, targets=None, *, s=32.0, m=0.35,
                            tile_p=512):
    x_nhwc = jnp.transpose(x_nchw, (0, 2, 3, 1))
    patches = im2col_3x3(x_nhwc)                            # [B, P, 9*C]
    B, P, _ = patches.shape
    tp = min(tile_p, _round_up(P, 8))                       # sublane-aligned tile
    P_pad = _round_up(P, tp)                                # pad P; bias-corrected
    patches = _pad_axis(patches, 1, P_pad).astype(jnp.bfloat16)
    hn = backbone_embed(patches, prep["wconv"], prep["bconv"],
                        prep["wfc"], prep["bfc"],
                        p_true=P, n_pad=P_pad - P, tile_p=tp,
                        vmem_limit=prep["vmem_limit"])      # [B, Ep] bf16
    if targets is None:
        return hn[:, :prep["emb_size"]]
    logits = cosface_logits(hn, prep["wn"], targets, s=s, m=m,
                            tile_l=prep["tile_l"], vmem_limit=prep["vmem_limit"])
    return logits[:, :prep["labels_num"]]


# ----------------------------------------------------------------------------
# References
# ----------------------------------------------------------------------------
def reference_prepared(prep, x_nchw, targets, *, s=32.0, m=0.35):
    """Pure-JAX reference with the same prep (BN fold, padding, bf16 casts)."""
    x_nhwc = jnp.transpose(x_nchw, (0, 2, 3, 1))
    patches = im2col_3x3(x_nhwc).astype(jnp.bfloat16)
    y = jnp.einsum("bpc,cf->bpf", patches, prep["wconv"],
                   preferred_element_type=jnp.float32) + prep["bconv"]
    feat = jnp.mean(jnp.maximum(y, 0.0), axis=1)
    h = jnp.dot(feat.astype(jnp.bfloat16), prep["wfc"],
                preferred_element_type=jnp.float32) + prep["bfc"]
    hn = h * jax.lax.rsqrt(jnp.maximum(jnp.sum(h * h, -1, keepdims=True), 1e-24))
    cos = jnp.dot(hn.astype(jnp.bfloat16), prep["wn"].T,
                  preferred_element_type=jnp.float32)
    onehot = jax.nn.one_hot(targets, prep["l_p"], dtype=cos.dtype)
    logits = (cos - m * onehot) * s
    return logits[:, :prep["labels_num"]], hn[:, :prep["emb_size"]]


def reference_f32(params, x_nchw, targets, *, s=32.0, m=0.35, bn_eps=1e-5):
    """Pure f32 reference mirroring the PyTorch forward (eval mode)."""
    x_nhwc = jnp.transpose(x_nchw, (0, 2, 3, 1))
    patches = im2col_3x3(x_nhwc)
    y = jnp.maximum(patches @ params["wconv"] + params["bconv"], 0.0)
    feat = jnp.mean(y, axis=1)
    h = feat @ params["wfc"] + params["bfc"]
    h = (h - params["rmean"]) / jnp.sqrt(params["rvar"] + bn_eps) \
        * params["gamma"] + params["beta"]
    hn = h / jnp.maximum(jnp.linalg.norm(h, axis=-1, keepdims=True), 1e-12)
    w = params["wcos"]
    wn = w / jnp.maximum(jnp.linalg.norm(w, axis=-1, keepdims=True), 1e-12)
    cos = hn @ wn.T
    onehot = jax.nn.one_hot(targets, w.shape[0], dtype=bool)
    return jnp.where(onehot, cos - m, cos) * s


if __name__ == "__main__":
    B, C, H, W = 2, 4, 16, 16
    init_features, emb_size, labels_num = 32, 32, 300
    s, m = 32.0, 0.35

    key = jax.random.PRNGKey(0)
    k_x, k_p = jax.random.split(key)
    x = jax.random.normal(k_x, (B, C, H, W), jnp.float32)   # NCHW as in PyTorch
    targets = jnp.array([3, 213], dtype=jnp.int32)          # spans L tiles
    params = make_params(k_p, C, init_features, emb_size, labels_num)
    prep = prepare_params(params)

    logits = jax.block_until_ready(
        cosface_encoder_forward(prep, x, targets, s=s, m=m))
    assert logits.shape == (B, labels_num)

    ref_logits, ref_emb = reference_prepared(prep, x, targets, s=s, m=m)
    assert jnp.allclose(logits, ref_logits, atol=2e-2, rtol=2e-2), (
        f"max err vs matched ref {jnp.max(jnp.abs(logits - ref_logits))}")

    f32_logits = reference_f32(params, x, targets, s=s, m=m)
    assert jnp.allclose(logits, f32_logits, atol=1.0), (
        f"max err vs f32 ref {jnp.max(jnp.abs(logits - f32_logits))}")

    # Embedding-only path (targets=None): returns bf16 normalized embeddings.
    emb = jax.block_until_ready(cosface_encoder_forward(prep, x, None))
    assert emb.shape == (B, emb_size)
    assert jnp.allclose(emb.astype(jnp.float32), ref_emb, atol=2e-2, rtol=2e-2)

    # Exercise the multi-step P reduction + padded-row bias correction path.
    logits_tiled = jax.block_until_ready(
        cosface_encoder_forward(prep, x, targets, s=s, m=m, tile_p=96))
    assert jnp.allclose(logits_tiled, ref_logits, atol=2e-2, rtol=2e-2), (
        f"max err (tiled P) {jnp.max(jnp.abs(logits_tiled - ref_logits))}")

    print("KERNEL_OK")
</pallas_src>

<mosaic_0001>
module attributes {stable_mosaic.version = 11 : i64} {
  func.func @_backbone_embed_kernel(%arg0: i32, %arg1: memref<2x256x36xbf16, #tpu.memory_space<vmem>>, %arg2: memref<36x256xbf16, #tpu.memory_space<vmem>>, %arg3: memref<1x256xf32, #tpu.memory_space<vmem>>, %arg4: memref<256x256xbf16, #tpu.memory_space<vmem>>, %arg5: memref<1x256xf32, #tpu.memory_space<vmem>>, %arg6: memref<2x256xbf16, #tpu.memory_space<vmem>>, %arg7: memref<2x256xf32, #tpu.memory_space<vmem>>) attributes {dimension_semantics = [#tpu.dimension_semantics<arbitrary>], iteration_bounds = array<i64: 1>, scalar_prefetch = 0 : i64, scratch_operands = 1 : i64, tpu.core_type = #tpu.core_type<tc>, window_params = [{transform_indices = @transform_0, window_bounds = array<i64: 2, 256, 36>}, {pipeline_mode = #tpu.pipeline_mode<synchronous>, transform_indices = @transform_1, window_bounds = array<i64: 36, 256>}, {pipeline_mode = #tpu.pipeline_mode<synchronous>, transform_indices = @transform_2, window_bounds = array<i64: 1, 256>}, {pipeline_mode = #tpu.pipeline_mode<synchronous>, transform_indices = @transform_3, window_bounds = array<i64: 256, 256>}, {pipeline_mode = #tpu.pipeline_mode<synchronous>, transform_indices = @transform_4, window_bounds = array<i64: 1, 256>}, {pipeline_mode = #tpu.pipeline_mode<synchronous>, transform_indices = @transform_5, window_bounds = array<i64: 2, 256>}]} {
    %c0_i32 = arith.constant 0 : i32
    %0 = arith.cmpi eq, %arg0, %c0_i32 : i32
    %1 = arith.extui %0 : i1 to i32
    %c0_i32_0 = arith.constant 0 : i32
    %2 = arith.cmpi ne, %1, %c0_i32_0 : i32
    scf.if %2 {
      %cst_15 = arith.constant 0.000000e+00 : f32
      %20 = vector.broadcast %cst_15 : f32 to vector<2x256xf32>
      %c0_16 = arith.constant 0 : index
      %c0_17 = arith.constant 0 : index
      %21 = vector.load %arg7[%c0_16, %c0_17] : memref<2x256xf32, #tpu.memory_space<vmem>>, vector<2x256xf32>
      tpu.vector_store %arg7[%c0_16, %c0_17], %20 {strides = array<i32>} : memref<2x256xf32, #tpu.memory_space<vmem>>, vector<2x256xf32>,
    } else {
    }
    %c0 = arith.constant 0 : index
    %c0_1 = arith.constant 0 : index
    %c0_2 = arith.constant 0 : index
    %3 = vector.load %arg1[%c0, %c0_1, %c0_2] : memref<2x256x36xbf16, #tpu.memory_space<vmem>>, vector<2x256x36xbf16>
    %4 = vector.shape_cast %3 : vector<2x256x36xbf16> to vector<512x36xbf16>
    %c0_3 = arith.constant 0 : index
    %c0_4 = arith.constant 0 : index
    %5 = vector.load %arg2[%c0_3, %c0_4] : memref<36x256xbf16, #tpu.memory_space<vmem>>, vector<36x256xbf16>
    %cst = arith.constant dense<0.000000e+00> : vector<512x256xf32>
    %6 = tpu.matmul %4, %5, %cst {dimension_numbers = #tpu.dot_dimension_numbers<[1], [0], [0], [1], [0, 0, 1, 1], [], []>} : vector<512x36xbf16>, vector<36x256xbf16>, vector<512x256xf32> -> vector<512x256xf32>
    %c0_5 = arith.constant 0 : index
    %c0_6 = arith.constant 0 : index
    %7 = vector.load %arg3[%c0_5, %c0_6] : memref<1x256xf32, #tpu.memory_space<vmem>>, vector<1x256xf32>
    %8 = vector.broadcast %7 : vector<1x256xf32> to vector<512x256xf32>
    %9 = arith.addf %6, %8 : vector<512x256xf32>
    %cst_7 = arith.constant 0.000000e+00 : f32
    %10 = vector.broadcast %cst_7 : f32 to vector<512x256xf32>
    %11 = arith.maximumf %9, %10 : vector<512x256xf32>
    %c0_8 = arith.constant 0 : index
    %c0_9 = arith.constant 0 : index
    %12 = vector.load %arg7[%c0_8, %c0_9] : memref<2x256xf32, #tpu.memory_space<vmem>>, vector<2x256xf32>
    %13 = vector.shape_cast %11 : vector<512x256xf32> to vector<2x256x256xf32>
    %cst_10 = arith.constant dense<0.000000e+00> : vector<2x256xf32>
    %14 = vector.multi_reduction <add>, %13, %cst_10 [1] : vector<2x256x256xf32> to vector<2x256xf32>
    %15 = arith.addf %12, %14 : vector<2x256xf32>
    %c0_11 = arith.constant 0 : index
    %c0_12 = arith.constant 0 : index
    %16 = vector.load %arg7[%c0_11, %c0_12] : memref<2x256xf32, #tpu.memory_space<vmem>>, vector<2x256xf32>
    tpu.vector_store %arg7[%c0_11, %c0_12], %15 {strides = array<i32>} : memref<2x256xf32, #tpu.memory_space<vmem>>, vector<2x256xf32>,
    %c0_i32_13 = arith.constant 0 : i32
    %17 = arith.cmpi eq, %arg0, %c0_i32_13 : i32
    %18 = arith.extui %17 : i1 to i32
    %c0_i32_14 = arith.constant 0 : i32
    %19 = arith.cmpi ne, %18, %c0_i32_14 : i32
    scf.if %19 {
      %c0_15 = arith.constant 0 : index
      %c0_16 = arith.constant 0 : index
      %20 = vector.load %arg7[%c0_15, %c0_16] : memref<2x256xf32, #tpu.memory_space<vmem>>, vector<2x256xf32>
      %cst_17 = arith.constant 3.906250e-03 : f32
      %21 = vector.broadcast %cst_17 : f32 to vector<2x256xf32>
      %22 = arith.mulf %20, %21 : vector<2x256xf32>
      %23 = arith.truncf %22 : vector<2x256xf32> to vector<2x256xbf16>
      %c0_18 = arith.constant 0 : index
      %c0_19 = arith.constant 0 : index
      %24 = vector.load %arg4[%c0_18, %c0_19] : memref<256x256xbf16, #tpu.memory_space<vmem>>, vector<256x256xbf16>
      %cst_20 = arith.constant dense<0.000000e+00> : vector<2x256xf32>
      %25 = tpu.matmul %23, %24, %cst_20 {dimension_numbers = #tpu.dot_dimension_numbers<[1], [0], [0], [1], [0, 0, 1, 1], [], []>} : vector<2x256xbf16>, vector<256x256xbf16>, vector<2x256xf32> -> vector<2x256xf32>
      %c0_21 = arith.constant 0 : index
      %c0_22 = arith.constant 0 : index
      %26 = vector.load %arg5[%c0_21, %c0_22] : memref<1x256xf32, #tpu.memory_space<vmem>>, vector<1x256xf32>
      %27 = vector.broadcast %26 : vector<1x256xf32> to vector<2x256xf32>
      %28 = arith.addf %25, %27 : vector<2x256xf32>
      %29 = arith.mulf %28, %28 : vector<2x256xf32>
      %cst_23 = arith.constant dense<0.000000e+00> : vector<2xf32>
      %30 = vector.multi_reduction <add>, %29, %cst_23 [1] : vector<2x256xf32> to vector<2xf32>
      %31 = vector.shape_cast %30 : vector<2xf32> to vector<2x1xf32>
      %cst_24 = arith.constant 1.000000e-24 : f32
      %32 = vector.broadcast %cst_24 : f32 to vector<2x1xf32>
      %33 = arith.maximumf %31, %32 : vector<2x1xf32>
      %34 = math.rsqrt %33 : vector<2x1xf32>
      %35 = vector.broadcast %34 : vector<2x1xf32> to vector<2x256xf32>
      %36 = arith.mulf %28, %35 : vector<2x256xf32>
      %37 = arith.truncf %36 : vector<2x256xf32> to vector<2x256xbf16>
      %c0_25 = arith.constant 0 : index
      %c0_26 = arith.constant 0 : index
      %38 = vector.load %arg6[%c0_25, %c0_26] : memref<2x256xbf16, #tpu.memory_space<vmem>>, vector<2x256xbf16>
      tpu.vector_store %arg6[%c0_25, %c0_26], %37 {strides = array<i32>} : memref<2x256xbf16, #tpu.memory_space<vmem>>, vector<2x256xbf16>,
    } else {
    }
    return
  }
  func.func @transform_0(%arg0: i32) -> (i32, i32, i32) {
    %c0_i32 = arith.constant 0 : i32
    %c0_i32_0 = arith.constant 0 : i32
    %c0_i32_1 = arith.constant 0 : i32
    return %c0_i32, %arg0, %c0_i32_0 : i32, i32, i32
  }
  func.func @transform_1(%arg0: i32) -> (i32, i32) {
    %c0_i32 = arith.constant 0 : i32
    %c0_i32_0 = arith.constant 0 : i32
    %c0_i32_1 = arith.constant 0 : i32
    return %c0_i32, %c0_i32_0 : i32, i32
  }
  func.func @transform_2(%arg0: i32) -> (i32, i32) {
    %c0_i32 = arith.constant 0 : i32
    %c0_i32_0 = arith.constant 0 : i32
    %c0_i32_1 = arith.constant 0 : i32
    return %c0_i32, %c0_i32_0 : i32, i32
  }
  func.func @transform_3(%arg0: i32) -> (i32, i32) {
    %c0_i32 = arith.constant 0 : i32
    %c0_i32_0 = arith.constant 0 : i32
    %c0_i32_1 = arith.constant 0 : i32
    return %c0_i32, %c0_i32_0 : i32, i32
  }
  func.func @transform_4(%arg0: i32) -> (i32, i32) {
    %c0_i32 = arith.constant 0 : i32
    %c0_i32_0 = arith.constant 0 : i32
    %c0_i32_1 = arith.constant 0 : i32
    return %c0_i32, %c0_i32_0 : i32, i32
  }
  func.func @transform_5(%arg0: i32) -> (i32, i32) {
    %c0_i32 = arith.constant 0 : i32
    %c0_i32_0 = arith.constant 0 : i32
    %c0_i32_1 = arith.constant 0 : i32
    return %c0_i32, %c0_i32_0 : i32, i32
  }
}

</mosaic_0001>

<bundles_post_ra>
// kernel: tpu_custom_call.1
= control target key start
LH: loop header
LB: loop body
LE: loop exit
PB: predicated region body
PF: predicated region fallthrough
CT: control target
= control target key end

     0   :  { %10 = vsyncpa [#allocation4], 0  ;;  %s2314_s0 = inlined_call_operand.hbm [shape: bf16[2,256,36], index: 0, kind: input, shape index: {}]   ;;  %s2315_s1 = inlined_call_operand.hbm [shape: bf16[36,256], index: 1, kind: input, shape index: {}]   ;;  %s2316_s2 = inlined_call_operand.hbm [shape: f32[1,256], index: 2, kind: input, shape index: {}]   ;;  %s2317_s3 = inlined_call_operand.hbm [shape: bf16[256,256], index: 3, kind: input, shape index: {}]   ;;  %s2318_s4 = inlined_call_operand.hbm [shape: f32[1,256], index: 4, kind: input, shape index: {}]   ;;  %s2319_s5 = inlined_call_operand.hbm [shape: bf16[2,256], index: 5, kind: output, shape index: {}]  }
   0x1   :  { %11 = vsyncpa [#allocation7], 0 }
   0x2   :  { %12 = vsyncpa [#allocation10], 0 }
   0x3   :  { %13 = vsyncpa [#allocation5], 0  ;;  %s1794_s18 = smov [#allocation6]   ;;  %s1654_s22 = scalar_lea.hbm %s2315_s1, 640 }
   0x4   :  { %s31_s19 = sshll.u32 %s1794_s18, 4  ;;  %p1655_p0 = scmp.ne.s32.totalorder %s2315_s1, %s1654_s22  ;;  %s32_s19 = int_to_ptr.vmem [resolvable:$true] %s31_s19 }
   0x5   :  { %p1658_p1 = scmp.lt.u32.totalorder %s1654_s22, %s2315_s1 }
   0x7   :  { %p1660_p2 = pnand %p1658_p1, %p1655_p0 }
   0x9   :  { %1663 = shalt.err (!%p1660_p2)
}
   0xa   :  { %s1664_s27 = scalar_lea.vmem %s32_s19, 640  ;;  %p1669_p4 = scmp.lt.s32.totalorder %s32_s19, %s32_s19 }
   0xb   :  { %p1665_p3 = scmp.ne.s32.totalorder %s32_s19, %s1664_s27  ;;  %p1670_p5 = scmp.lt.s32.totalorder %s1664_s27, %s1664_s27 }
   0xd   :  { %p1671_p6 = por %p1670_p5, %p1669_p4 }
   0xf   :  { %p1672_p7 = pnand %p1671_p6, %p1665_p3 }
  0x11   :  { %1675 = shalt.err (!%p1672_p7)
}
  0x12   :  { %s1795_s28 = smov 128   ;;  %s1796_s29 = smov 8  }
  0x13   :  { %37 = dma.hbm_to_vmem [thread:$0]  %s2315_s1, 640, %s32_s19, [#allocation7], %s1795_s28, %s1795_s28, %s1796_s29  }
  0x14   :  { %s1797_s7 = smov [#allocation9]   ;;  %s1798_s9 = smov [#allocation3]  }
  0x15   :  { %s53_s8 = sshll.u32 %s1797_s7, 4  ;;  %s19_s10 = sshll.u32 %s1798_s9, 4  ;;  %s54_s8 = int_to_ptr.vmem [resolvable:$true] %s53_s8  ;;  %s20_s10 = int_to_ptr.vmem [resolvable:$true] %s19_s10 }
  0x16   :  { %s1676_s13 = scalar_lea.hbm %s2317_s3, 4096 }
  0x17   :  { %p1677_p8 = scmp.ne.s32.totalorder %s2317_s3, %s1676_s13  ;;  %p1680_p9 = scmp.lt.u32.totalorder %s1676_s13, %s2317_s3 }
  0x19   :  { %p1682_p10 = pnand %p1680_p9, %p1677_p8 }
  0x1b   :  { %1685 = shalt.err (!%p1682_p10)
}
  0x1c   :  { %s1686_s1 = scalar_lea.vmem %s54_s8, 4096  ;;  %p1691_p12 = scmp.lt.s32.totalorder %s54_s8, %s54_s8 }
  0x1d   :  { %p1687_p11 = scmp.ne.s32.totalorder %s54_s8, %s1686_s1  ;;  %p1692_p13 = scmp.lt.s32.totalorder %s1686_s1, %s1686_s1 }
  0x1f   :  { %p1693_p0 = por %p1692_p13, %p1691_p12 }
  0x21   :  { %p1694_p1 = pnand %p1693_p0, %p1687_p11 }
  0x23   :  { %1697 = shalt.err (!%p1694_p1)
}
  0x24   :  { %59 = dma.hbm_to_vmem [thread:$0]  %s2317_s3, 4096, %s54_s8, [#allocation10], %s1795_s28, %s1795_s28, %s1796_s29  }
  0x25   :  { %s1698_s22 = scalar_lea.hbm %s2314_s0, 4096 }
  0x26   :  { %p1699_p2 = scmp.ne.s32.totalorder %s2314_s0, %s1698_s22  ;;  %p1702_p3 = scmp.lt.u32.totalorder %s1698_s22, %s2314_s0 }
  0x28   :  { %p1704_p4 = pnand %p1702_p3, %p1699_p2 }
  0x2a   :  { %1707 = shalt.err (!%p1704_p4)
}
  0x2b   :  { %s1708_s27 = scalar_lea.vmem %s20_s10, 4096  ;;  %p1713_p6 = scmp.lt.s32.totalorder %s20_s10, %s20_s10 }
  0x2c   :  { %p1709_p5 = scmp.ne.s32.totalorder %s20_s10, %s1708_s27  ;;  %p1714_p7 = scmp.lt.s32.totalorder %s1708_s27, %s1708_s27 }
  0x2e   :  { %p1715_p8 = por %p1714_p7, %p1713_p6 }
  0x30   :  { %p1716_p9 = pnand %p1715_p8, %p1709_p5 }
  0x32   :  { %1719 = shalt.err (!%p1716_p9)
}
  0x33   :  { %s1799_s3 = smov 64   ;;  %s1800_s28 = smov 4  }
  0x34   :  { %25 = dma.hbm_to_vmem [thread:$0]  %s2314_s0, 4096, %s20_s10, [#allocation4], %s1799_s3, %s1799_s3, %s1800_s28  }
  0x35   :  { %s1801_s6 = smov [#allocation8]   ;;  %s1802_s8 = smov [#allocation11]  }
  0x36   :  { %s44_s7 = sshll.u32 %s1801_s6, 4  ;;  %s66_s9 = sshll.u32 %s1802_s8, 4  ;;  %s45_s7 = int_to_ptr.vmem [resolvable:$true] %s44_s7  ;;  %s67_s9 = int_to_ptr.vmem [resolvable:$true] %s66_s9 }
  0x37   :  { %s1720_s13 = scalar_lea.hbm %s2316_s2, 32 }
  0x38   :  { %p1721_p10 = scmp.ne.s32.totalorder %s2316_s2, %s1720_s13  ;;  %p1724_p11 = scmp.lt.u32.totalorder %s1720_s13, %s2316_s2 }
  0x3a   :  { %p1726_p12 = pnand %p1724_p11, %p1721_p10 }
  0x3c   :  { %1729 = shalt.err (!%p1726_p12)
}
  0x3d   :  { %s1730_s0 = scalar_lea.vmem %s45_s7, 32  ;;  %p1735_p0 = scmp.lt.s32.totalorder %s45_s7, %s45_s7 }
  0x3e   :  { %p1731_p13 = scmp.ne.s32.totalorder %s45_s7, %s1730_s0  ;;  %p1736_p1 = scmp.lt.s32.totalorder %s1730_s0, %s1730_s0 }
  0x40   :  { %p1737_p2 = por %p1736_p1, %p1735_p0 }
  0x42   :  { %p1738_p3 = pnand %p1737_p2, %p1731_p13 }
  0x44   :  { %1741 = shalt.err (!%p1738_p3)
}
  0x45   :  { %47 = dma.hbm_to_vmem [thread:$0]  %s2316_s2, 32, %s45_s7, [#allocation7]  }
  0x46   :  { %s1742_s20 = scalar_lea.hbm %s2318_s4, 32 }
  0x47   :  { %p1743_p4 = scmp.ne.s32.totalorder %s2318_s4, %s1742_s20  ;;  %p1746_p5 = scmp.lt.u32.totalorder %s1742_s20, %s2318_s4 }
  0x49   :  { %p1748_p6 = pnand %p1746_p5, %p1743_p4 }
  0x4b   :  { %1751 = shalt.err (!%p1748_p6)
}
  0x4c   :  { %s1752_s25 = scalar_lea.vmem %s67_s9, 32  ;;  %p1757_p8 = scmp.lt.s32.totalorder %s67_s9, %s67_s9 }
  0x4d   :  { %p1753_p7 = scmp.ne.s32.totalorder %s67_s9, %s1752_s25  ;;  %p1758_p9 = scmp.lt.s32.totalorder %s1752_s25, %s1752_s25 }
  0x4f   :  { %p1759_p10 = por %p1758_p9, %p1757_p8 }
  0x51   :  { %p1760_p11 = pnand %p1759_p10, %p1753_p7 }
  0x53   :  { %1763 = shalt.err (!%p1760_p11)
}
  0x54   :  { %69 = dma.hbm_to_vmem [thread:$0]  %s2318_s4, 32, %s67_s9, [#allocation10]  }
  0x55   :  { %1786 = dma.done.wait [#allocation4], 4096  }
  0x56   :  { %1787 = vsyncadd [#allocation4], 4294963200 }
  0x57   :  { %1788 = dma.done.wait [#allocation7], 672  }
  0x58   :  { %1789 = vsyncadd [#allocation7], 4294966624 }
  0x59   :  { %1790 = dma.done.wait [#allocation10], 4128  }
  0x5a   :  { %1791 = vsyncadd [#allocation10], 4294963168  ;;  %v1803_v0 = vmov 0   ;;  %v1564_v1 = vld [vmem:[#allocation6 + $0x4] ss:$8 sps:$4 sm:$0xff]   ;;  %vm454_vm0 = vcmask 1041408   ;;  %v162_v41 = vlaneseq }
  0x5b   :  { %493 = vmatprep.mubr.bf16.mxu0 %v1803_v0  ;;  %663 = vmatprep.mubr.bf16.mxu1 %v1803_v0  ;;  %v1566_v2 = vld [vmem:[#allocation6] ss:$8 sps:$4 sm:$0xff]   ;;  %v1567_v3 = vld [vmem:[#allocation6 + $0x14] ss:$8 sps:$4 sm:$0xff]   ;;  %v1569_v5 = vld [vmem:[#allocation6 + $0x10] ss:$8 sps:$4 sm:$0xff]  }
  0x5c   :  { %461 = vmatprep.subr.bf16.mxu0 %v1564_v1  ;;  %v159_v4 = vld [vmem:[#allocation6 + $0x20] sm:$0x33]  ;;  %1544 = vmatprep.subr.bf16.mxu1 %v1564_v1  ;;  %vm357_vm1 = vcmask 293888   ;;  %v1582_v10 = vld [vmem:[#allocation3 + $0x88] sm:$0xff]   ;;  %v1584_v12 = vld [vmem:[#allocation3 + $0x90] sm:$0xff]   ;;  %v1965_v42 = vshrl.u32 %v162_v41, 7 }
  0x5d   :  { %462 = vmatpush1.bf16.msra.mxu0 %v1566_v2  ;;  %1547 = vmatpush1.bf16.msra.mxu1 %v1566_v2  ;;  %v1476_v6 = vcombine.high %v159_v4, %v159_v4  ;;  %v1475_v7 = vcombine.low %v159_v4, %v159_v4  ;;  %v1572_v9 = vld [vmem:[#allocation3] sm:$0xff]   ;;  %v1573_v11 = vld [vmem:[#allocation3 + $0x8] sm:$0xff]   ;;  %v1574_v13 = vld [vmem:[#allocation3 + $0x10] sm:$0xff]   ;;  %vm1116_vm2 = vcmask 1041409   ;;  %vm1118_vm3 = vcmask 1043459   ;;  %s1807_s4 = smov [#allocation12]  }
  0x5e   :  { %463 = vmatprep.subr.bf16.mxu0 %v1567_v3  ;;  %1545 = vmatprep.subr.bf16.mxu1 %v1567_v3  ;;  %v1586_v14 = vld [vmem:[#allocation3 + $0x98] sm:$0xff]   ;;  %v1588_v16 = vld [vmem:[#allocation3 + $0xa0] sm:$0xff]   ;;  %v1590_v18 = vld [vmem:[#allocation3 + $0xa8] sm:$0xff]   ;;  %2324 = vst [vmem:[#allocation17_spill] sm:$0xff] %v1965_v42  ;;  %v2321_v45 = vsub.s32 0, %v1965_v42  ;;  %v2320_v47 = vsub.s32 1, %v1965_v42 }
  0x5f   :  { %v456_v8 = vsel %vm454_vm0, %v1475_v7, 0  ;;  %v1575_v15 = vld [vmem:[#allocation3 + $0x18] sm:$0xff]   ;;  %v1576_v17 = vld [vmem:[#allocation3 + $0x20] sm:$0xff]   ;;  %v1577_v19 = vld [vmem:[#allocation3 + $0x28] sm:$0xff]   ;;  %vm1120_vm4 = vcmask 1045509   ;;  %vm1122_vm5 = vcmask 1047559  }
  0x60   :  { %v1592_v20 = vld [vmem:[#allocation3 + $0xb0] sm:$0xff]   ;;  %v1594_v22 = vld [vmem:[#allocation3 + $0xb8] sm:$0xff]   ;;  %v1596_v24 = vld [vmem:[#allocation3 + $0xc0] sm:$0xff]   ;;  %s1428_s27 = sshll.u32 %s1807_s4, 4  ;;  %s1429_s27 = int_to_ptr.vmem [resolvable:$true] %s1428_s27 }
  0x61   :  { %464 = vmatpush1.bf16.msra.mxu0 %v1569_v5  ;;  %1548 = vmatpush1.bf16.msra.mxu1 %v1569_v5  ;;  %v1578_v21 = vld [vmem:[#allocation3 + $0x30] sm:$0xff]   ;;  %v1579_v23 = vld [vmem:[#allocation3 + $0x38] sm:$0xff]   ;;  %v1580_v25 = vld [vmem:[#allocation3 + $0x40] sm:$0xff]   ;;  %s1764_s3 = scalar_lea.vmem %s1429_s27, 32  ;;  %p1769_p13 = scmp.lt.s32.totalorder %s1429_s27, %s1429_s27 }
  0x62   :  { %1477 = vmatprep.subr.msk.bf16.mxu0 %vm454_vm0, %v1476_v6  ;;  %1546 = vmatprep.subr.msk.bf16.mxu1 %vm454_vm0, %v1476_v6  ;;  %v1597_v26 = vld [vmem:[#allocation3 + $0xc8] sm:$0xff]   ;;  %v1598_v28 = vld [vmem:[#allocation3 + $0xd0] sm:$0xff]   ;;  %v1599_v30 = vld [vmem:[#allocation3 + $0xd8] sm:$0xff]   ;;  %p1765_p12 = scmp.ne.s32.totalorder %s1429_s27, %s1764_s3  ;;  %p1770_p0 = scmp.lt.s32.totalorder %s1764_s3, %s1764_s3 }
  0x63   :  { %v1581_v27 = vld [vmem:[#allocation3 + $0x48] sm:$0xff]   ;;  %v1583_v29 = vld [vmem:[#allocation3 + $0x50] sm:$0xff]   ;;  %v1585_v31 = vld [vmem:[#allocation3 + $0x58] sm:$0xff]  }
  0x64   :  { %v1600_v32 = vld [vmem:[#allocation3 + $0xe0] sm:$0xff]   ;;  %v1601_v34 = vld [vmem:[#allocation3 + $0xe8] sm:$0xff]   ;;  %v1602_v36 = vld [vmem:[#allocation3 + $0xf0] sm:$0xff]   ;;  %p1771_p1 = por %p1770_p0, %p1769_p13 }
  0x65   :  { %466 = vmatpush1.bf16.msra.mxu0 %v456_v8  ;;  %1549 = vmatpush1.bf16.msra.mxu1 %v456_v8  ;;  %v1587_v33 = vld [vmem:[#allocation3 + $0x60] sm:$0xff]   ;;  %v1589_v35 = vld [vmem:[#allocation3 + $0x68] sm:$0xff]   ;;  %v1591_v37 = vld [vmem:[#allocation3 + $0x70] sm:$0xff]  }
  0x66   :  { %v1603_v38 = vld [vmem:[#allocation3 + $0xf8] sm:$0xff]   ;;  %v1595_v40 = vld [vmem:[#allocation3 + $0x80] sm:$0xff]   ;;  %v1604_v43 = vld [vmem:[#allocation9] ss:$8 sps:$4 sm:$0xff]   ;;  %p1772_p2 = pnand %p1771_p1, %p1765_p12 }
  0x67   :  { %v1593_v39 = vld [vmem:[#allocation3 + $0x78] sm:$0xff]   ;;  %v160_v46 = vld [vmem:[#allocation8] sm:$0x3] }
  0x68   :  { %1478 = vmatmul.mubr.msk.bf16.vlgmr.msra.gmra.mrb[0].mxu0 %vm357_vm1, %v1572_v9  ;;  %1495 = vmatmul.mubr.msk.bf16.vlgmr.msra.gmra.mrb[0].mxu1 %vm357_vm1, %v1582_v10  ;;  %v1606_v44 = vld [vmem:[#allocation9 + $0x4] ss:$8 sps:$4 sm:$0xff]   ;;  %v1971_v48 = vrot.slane %v160_v46, %v2321_v45  ;;  %v1975_v49 = vrot.slane %v160_v46, %v2320_v47 }
  0x69   :  { %503 = vmatprep.mubr.bf16.mxu0 %v1803_v0  ;;  %673 = vmatprep.mubr.bf16.mxu1 %v1803_v0  ;;  %v1636_v45 = vld [vmem:[#allocation9 + $0xa4] ss:$8 sps:$4 sm:$0xff]  }
  0x6a   :  { %1349 = vmatprep.subr.bf16.mxu1 %v1606_v44 }
  0x6b   :  { %1350 = vmatpush1.bf16.msra.mxu1 %v1604_v43 }
  0x70   :  { %1479 = vmatmul.mubr.msk.bf16.gmra.mrb[4].mxu0 %vm357_vm1, %v1573_v11  ;;  %1496 = vmatmul.mubr.msk.bf16.gmra.mrb[4].mxu1 %vm357_vm1, %v1584_v12 }
  0x71   :  { %513 = vmatprep.mubr.bf16.mxu0 %v1803_v0  ;;  %683 = vmatprep.mubr.bf16.mxu1 %v1803_v0 }
  0x78   :  { %1480 = vmatmul.mubr.msk.bf16.gmra.mrb[8].mxu0 %vm357_vm1, %v1574_v13  ;;  %1497 = vmatmul.mubr.msk.bf16.gmra.mrb[8].mxu1 %vm357_vm1, %v1586_v14 }
  0x79   :  { %523 = vmatprep.mubr.bf16.mxu0 %v1803_v0  ;;  %693 = vmatprep.mubr.bf16.mxu1 %v1803_v0 }
  0x80   :  { %1481 = vmatmul.mubr.msk.bf16.gmra.mrb[12].mxu0 %vm357_vm1, %v1575_v15  ;;  %1498 = vmatmul.mubr.msk.bf16.gmra.mrb[12].mxu1 %vm357_vm1, %v1588_v16 }
  0x81   :  { %533 = vmatprep.mubr.bf16.mxu0 %v1803_v0  ;;  %703 = vmatprep.mubr.bf16.mxu1 %v1803_v0 }
  0x88   :  { %1482 = vmatmul.mubr.msk.bf16.gmra.mrb[16].mxu0 %vm357_vm1, %v1576_v17  ;;  %1499 = vmatmul.mubr.msk.bf16.gmra.mrb[16].mxu1 %vm357_vm1, %v1590_v18 }
  0x89   :  { %543 = vmatprep.mubr.bf16.mxu0 %v1803_v0  ;;  %713 = vmatprep.mubr.bf16.mxu1 %v1803_v0 }
  0x90   :  { %1483 = vmatmul.mubr.msk.bf16.gmra.mrb[20].mxu0 %vm357_vm1, %v1577_v19  ;;  %1500 = vmatmul.mubr.msk.bf16.gmra.mrb[20].mxu1 %vm357_vm1, %v1592_v20 }
  0x91   :  { %553 = vmatprep.mubr.bf16.mxu0 %v1803_v0  ;;  %723 = vmatprep.mubr.bf16.mxu1 %v1803_v0 }
  0x98   :  { %1484 = vmatmul.mubr.msk.bf16.gmra.mrb[24].mxu0 %vm357_vm1, %v1578_v21  ;;  %1501 = vmatmul.mubr.msk.bf16.gmra.mrb[24].mxu1 %vm357_vm1, %v1594_v22  ;;  %v1607_v22 = vld [vmem:[#allocation9 + $0x10] ss:$8 sps:$4 sm:$0xff]  }
  0x99   :  { %563 = vmatprep.mubr.bf16.mxu0 %v1803_v0  ;;  %733 = vmatprep.mubr.bf16.mxu1 %v1803_v0 }
  0xa0   :  { %1485 = vmatmul.mubr.msk.bf16.gmra.mrb[28].mxu0 %vm357_vm1, %v1579_v23  ;;  %1502 = vmatmul.mubr.msk.bf16.gmra.mrb[28].mxu1 %vm357_vm1, %v1596_v24  ;;  %v1609_v23 = vld [vmem:[#allocation9 + $0x14] ss:$8 sps:$4 sm:$0xff]  }
  0xa1   :  { %573 = vmatprep.mubr.bf16.mxu0 %v1803_v0  ;;  %743 = vmatprep.mubr.bf16.mxu1 %v1803_v0 }
  0xa2   :  { %1351 = vmatprep.subr.bf16.mxu1 %v1609_v23 }
  0xa3   :  { %1352 = vmatpush1.bf16.msra.mxu1 %v1607_v22 }
  0xa8   :  { %1486 = vmatmul.mubr.msk.bf16.gmra.mrb[32].mxu0 %vm357_vm1, %v1580_v25  ;;  %1503 = vmatmul.mubr.msk.bf16.gmra.mrb[32].mxu1 %vm357_vm1, %v1597_v26 }
  0xa9   :  { %583 = vmatprep.mubr.bf16.mxu0 %v1803_v0  ;;  %753 = vmatprep.mubr.bf16.mxu1 %v1803_v0 }
  0xb0   :  { %1487 = vmatmul.mubr.msk.bf16.gmra.mrb[36].mxu0 %vm357_vm1, %v1581_v27  ;;  %1504 = vmatmul.mubr.msk.bf16.gmra.mrb[36].mxu1 %vm357_vm1, %v1598_v28 }
  0xb1   :  { %593 = vmatprep.mubr.bf16.mxu0 %v1803_v0  ;;  %763 = vmatprep.mubr.bf16.mxu1 %v1803_v0 }
  0xb8   :  { %1488 = vmatmul.mubr.msk.bf16.gmra.mrb[40].mxu0 %vm357_vm1, %v1583_v29  ;;  %1505 = vmatmul.mubr.msk.bf16.gmra.mrb[40].mxu1 %vm357_vm1, %v1599_v30 }
  0xb9   :  { %603 = vmatprep.mubr.bf16.mxu0 %v1803_v0  ;;  %773 = vmatprep.mubr.bf16.mxu1 %v1803_v0 }
  0xc0   :  { %1489 = vmatmul.mubr.msk.bf16.gmra.mrb[44].mxu0 %vm357_vm1, %v1585_v31  ;;  %1506 = vmatmul.mubr.msk.bf16.gmra.mrb[44].mxu1 %vm357_vm1, %v1600_v32 }
  0xc1   :  { %613 = vmatprep.mubr.bf16.mxu0 %v1803_v0  ;;  %783 = vmatprep.mubr.bf16.mxu1 %v1803_v0 }
  0xc8   :  { %1490 = vmatmul.mubr.msk.bf16.gmra.mrb[48].mxu0 %vm357_vm1, %v1587_v33  ;;  %1507 = vmatmul.mubr.msk.bf16.gmra.mrb[48].mxu1 %vm357_vm1, %v1601_v34 }
  0xc9   :  { %623 = vmatprep.mubr.bf16.mxu0 %v1803_v0  ;;  %793 = vmatprep.mubr.bf16.mxu1 %v1803_v0 }
  0xd0   :  { %1491 = vmatmul.mubr.msk.bf16.gmra.mrb[52].mxu0 %vm357_vm1, %v1589_v35  ;;  %1508 = vmatmul.mubr.msk.bf16.gmra.mrb[52].mxu1 %vm357_vm1, %v1602_v36 }
  0xd1   :  { %633 = vmatprep.mubr.bf16.mxu0 %v1803_v0  ;;  %803 = vmatprep.mubr.bf16.mxu1 %v1803_v0 }
  0xd8   :  { %1492 = vmatmul.mubr.msk.bf16.gmra.mrb[56].mxu0 %vm357_vm1, %v1591_v37  ;;  %1509 = vmatmul.mubr.msk.bf16.gmra.mrb[56].mxu1 %vm357_vm1, %v1603_v38 }
  0xd9   :  { %643 = vmatprep.mubr.bf16.mxu0 %v1803_v0 }
  0xe0   :  { %1493 = vmatmul.mubr.msk.bf16.gmra.mrb[60].mxu0 %vm357_vm1, %v1593_v39 }
  0xe1   :  { %653 = vmatprep.mubr.bf16.mxu0 %v1803_v0 }
  0xe8   :  { %1494 = vmatmul.mubr.msk.bf16.gmra.mrb[64].mxu0 %vm357_vm1, %v1595_v40 }
 0x13b   :  { %v495_v50 = vpop.f32.mrb[0].mxu0  ;;  %v1978_v53 = vpop.f32.mrb[0].mxu1 }
 0x13c   :  { %v496_v51 = vadd.f32 %v495_v50, %v1971_v48  ;;  %v497_v52 = vpop.f32.mrb[1].mxu0  ;;  %v1981_v56 = vpop.f32.mrb[1].mxu1 }
 0x13d   :  { %v498_v54 = vadd.f32 %v497_v52, %v1975_v49  ;;  %v499_v55 = vpop.f32.mrb[2].mxu0  ;;  %v1984_v59 = vpop.f32.mrb[2].mxu1 }
 0x13e   :  { %v500_v57 = vadd.f32 %v499_v55, %v1971_v48  ;;  %v501_v58 = vpop.f32.mrb[3].mxu0  ;;  %v1987_v61 = vpop.f32.mrb[3].mxu1  ;;  %v814_v62 = vmax.f32 %v496_v51, 0.0 }
 0x13f   :  { %v502_v60 = vadd.f32 %v501_v58, %v1975_v49  ;;  %v815_v0 = vmax.f32 %v498_v54, 0.0 }
 0x140   :  { %v816_v63 = vmax.f32 %v500_v57, 0.0 }
 0x141   :  { %v817_v1 = vmax.f32 %v502_v60, 0.0 }
 0x142   :  { %v943_v2 = vadd.f32 %v816_v63, %v814_v62 }
 0x143   :  { %v980_v3 = vadd.f32 %v817_v1, %v815_v0  ;;  %v505_v4 = vpop.f32.mrb[4].mxu0  ;;  %v1990_v7 = vpop.f32.mrb[4].mxu1 }
 0x144   :  { %v506_v5 = vadd.f32 %v505_v4, %v1971_v48  ;;  %v507_v6 = vpop.f32.mrb[5].mxu0  ;;  %v1993_v10 = vpop.f32.mrb[5].mxu1 }
 0x145   :  { %v508_v8 = vadd.f32 %v507_v6, %v1975_v49  ;;  %v509_v9 = vpop.f32.mrb[6].mxu0  ;;  %v1996_v14 = vpop.f32.mrb[6].mxu1 }
 0x146   :  { %v818_v11 = vmax.f32 %v506_v5, 0.0  ;;  %v510_v12 = vadd.f32 %v509_v9, %v1971_v48  ;;  %v511_v13 = vpop.f32.mrb[7].mxu0  ;;  %v1999_v17 = vpop.f32.mrb[7].mxu1 }
 0x147   :  { %v819_v15 = vmax.f32 %v508_v8, 0.0  ;;  %v512_v16 = vadd.f32 %v511_v13, %v1975_v49 }
 0x148   :  { %v944_v18 = vadd.f32 %v943_v2, %v818_v11  ;;  %v820_v19 = vmax.f32 %v510_v12, 0.0 }
 0x149   :  { %v981_v20 = vadd.f32 %v980_v3, %v819_v15  ;;  %v821_v21 = vmax.f32 %v512_v16, 0.0 }
 0x14a   :  { %v945_v24 = vadd.f32 %v944_v18, %v820_v19 }
 0x14b   :  { %v982_v25 = vadd.f32 %v981_v20, %v821_v21  ;;  %v515_v26 = vpop.f32.mrb[8].mxu0  ;;  %v2002_v29 = vpop.f32.mrb[8].mxu1 }
 0x14c   :  { %v516_v27 = vadd.f32 %v515_v26, %v1971_v48  ;;  %v517_v28 = vpop.f32.mrb[9].mxu0  ;;  %v2005_v32 = vpop.f32.mrb[9].mxu1 }
 0x14d   :  { %v518_v30 = vadd.f32 %v517_v28, %v1975_v49  ;;  %v519_v31 = vpop.f32.mrb[10].mxu0  ;;  %v2008_v36 = vpop.f32.mrb[10].mxu1 }
 0x14e   :  { %v822_v33 = vmax.f32 %v516_v27, 0.0  ;;  %v520_v34 = vadd.f32 %v519_v31, %v1971_v48  ;;  %v521_v35 = vpop.f32.mrb[11].mxu0  ;;  %v2011_v39 = vpop.f32.mrb[11].mxu1 }
 0x14f   :  { %v823_v37 = vmax.f32 %v518_v30, 0.0  ;;  %v522_v38 = vadd.f32 %v521_v35, %v1975_v49 }
 0x150   :  { %v946_v40 = vadd.f32 %v945_v24, %v822_v33  ;;  %v824_v41 = vmax.f32 %v520_v34, 0.0 }
 0x151   :  { %v983_v43 = vadd.f32 %v982_v25, %v823_v37  ;;  %v825_v44 = vmax.f32 %v522_v38, 0.0 }
 0x152   :  { %v947_v46 = vadd.f32 %v946_v40, %v824_v41  ;;  %v1610_v40 = vld [vmem:[#allocation9 + $0x20] ss:$8 sps:$4 sm:$0xff]   ;;  %v1612_v41 = vld [vmem:[#allocation9 + $0x24] ss:$8 sps:$4 sm:$0xff]  }
 0x153   :  { %v984_v50 = vadd.f32 %v983_v43, %v825_v44  ;;  %v525_v51 = vpop.f32.mrb[12].mxu0  ;;  %v2014_v55 = vpop.f32.mrb[12].mxu1  ;;  %1353 = vmatprep.subr.bf16.mxu1 %v1612_v41 }
 0x154   :  { %v526_v52 = vadd.f32 %v525_v51, %v1971_v48  ;;  %v527_v54 = vpop.f32.mrb[13].mxu0  ;;  %v2017_v60 = vpop.f32.mrb[13].mxu1  ;;  %1354 = vmatpush1.bf16.msra.mxu1 %v1610_v40  ;;  %v1619_v40 = vld [vmem:[#allocation9 + $0x50] ss:$8 sps:$4 sm:$0xff]  }
 0x155   :  { %v528_v57 = vadd.f32 %v527_v54, %v1975_v49  ;;  %v529_v58 = vpop.f32.mrb[14].mxu0  ;;  %v2020_v1 = vpop.f32.mrb[14].mxu1 }
 0x156   :  { %v826_v62 = vmax.f32 %v526_v52, 0.0  ;;  %v530_v63 = vadd.f32 %v529_v58, %v1971_v48  ;;  %v531_v0 = vpop.f32.mrb[15].mxu0  ;;  %v2023_v4 = vpop.f32.mrb[15].mxu1 }
 0x157   :  { %v827_v2 = vmax.f32 %v528_v57, 0.0  ;;  %v532_v3 = vadd.f32 %v531_v0, %v1975_v49 }
 0x158   :  { %v948_v5 = vadd.f32 %v947_v46, %v826_v62  ;;  %v828_v6 = vmax.f32 %v530_v63, 0.0 }
 0x159   :  { %v985_v8 = vadd.f32 %v984_v50, %v827_v2  ;;  %v829_v9 = vmax.f32 %v532_v3, 0.0  ;;  %v1613_v3 = vld [vmem:[#allocation9 + $0x30] ss:$8 sps:$4 sm:$0xff]  }
 0x15a   :  { %v949_v11 = vadd.f32 %v948_v5, %v828_v6 }
 0x15b   :  { %v986_v12 = vadd.f32 %v985_v8, %v829_v9  ;;  %v535_v13 = vpop.f32.mrb[16].mxu0  ;;  %v2026_v18 = vpop.f32.mrb[16].mxu1  ;;  %v1615_v8 = vld [vmem:[#allocation9 + $0x34] ss:$8 sps:$4 sm:$0xff]  }
 0x15c   :  { %v536_v15 = vadd.f32 %v535_v13, %v1971_v48  ;;  %v537_v16 = vpop.f32.mrb[17].mxu0  ;;  %v2029_v21 = vpop.f32.mrb[17].mxu1  ;;  %1355 = vmatprep.subr.bf16.mxu1 %v1615_v8 }
 0x15d   :  { %v538_v19 = vadd.f32 %v537_v16, %v1975_v49  ;;  %v539_v20 = vpop.f32.mrb[18].mxu0  ;;  %v2032_v25 = vpop.f32.mrb[18].mxu1  ;;  %1356 = vmatpush1.bf16.msra.mxu1 %v1613_v3  ;;  %v1616_v16 = vld [vmem:[#allocation9 + $0x40] ss:$8 sps:$4 sm:$0xff]  }
 0x15e   :  { %v830_v22 = vmax.f32 %v536_v15, 0.0  ;;  %v540_v23 = vadd.f32 %v539_v20, %v1971_v48  ;;  %v541_v24 = vpop.f32.mrb[19].mxu0  ;;  %v2035_v28 = vpop.f32.mrb[19].mxu1 }
 0x15f   :  { %v831_v26 = vmax.f32 %v538_v19, 0.0  ;;  %v542_v27 = vadd.f32 %v541_v24, %v1975_v49  ;;  %v1618_v19 = vld [vmem:[#allocation9 + $0x44] ss:$8 sps:$4 sm:$0xff]  }
 0x160   :  { %v950_v30 = vadd.f32 %v949_v11, %v830_v22  ;;  %v832_v31 = vmax.f32 %v540_v23, 0.0  ;;  %1357 = vmatprep.subr.bf16.mxu1 %v1618_v19 }
 0x161   :  { %v987_v33 = vadd.f32 %v986_v12, %v831_v26  ;;  %v833_v34 = vmax.f32 %v542_v27, 0.0  ;;  %1358 = vmatpush1.bf16.msra.mxu1 %v1616_v16 }
 0x162   :  { %v951_v35 = vadd.f32 %v950_v30, %v832_v31 }
 0x163   :  { %v988_v37 = vadd.f32 %v987_v33, %v833_v34  ;;  %v545_v38 = vpop.f32.mrb[20].mxu0  ;;  %v2038_v46 = vpop.f32.mrb[20].mxu1 }
 0x164   :  { %v546_v43 = vadd.f32 %v545_v38, %v1971_v48  ;;  %v547_v44 = vpop.f32.mrb[21].mxu0  ;;  %v2041_v52 = vpop.f32.mrb[21].mxu1 }
 0x165   :  { %v548_v50 = vadd.f32 %v547_v44, %v1975_v49  ;;  %v549_v51 = vpop.f32.mrb[22].mxu0  ;;  %v2044_v62 = vpop.f32.mrb[22].mxu1  ;;  %v1621_v44 = vld [vmem:[#allocation9 + $0x54] ss:$8 sps:$4 sm:$0xff]  }
 0x166   :  { %v834_v54 = vmax.f32 %v546_v43, 0.0  ;;  %v550_v57 = vadd.f32 %v549_v51, %v1971_v48  ;;  %v551_v58 = vpop.f32.mrb[23].mxu0  ;;  %v2047_v2 = vpop.f32.mrb[23].mxu1  ;;  %1359 = vmatprep.subr.bf16.mxu1 %v1621_v44  ;;  %v1628_v44 = vld [vmem:[#allocation9 + $0x80] ss:$8 sps:$4 sm:$0xff]  }
 0x167   :  { %v835_v63 = vmax.f32 %v548_v50, 0.0  ;;  %v552_v0 = vadd.f32 %v551_v58, %v1975_v49  ;;  %1360 = vmatpush1.bf16.msra.mxu1 %v1619_v40 }
 0x168   :  { %v952_v5 = vadd.f32 %v951_v35, %v834_v54  ;;  %v836_v6 = vmax.f32 %v550_v57, 0.0  ;;  %v1624_v57 = vld [vmem:[#allocation9 + $0x64] ss:$8 sps:$4 sm:$0xff]  }
 0x169   :  { %v989_v9 = vadd.f32 %v988_v37, %v835_v63  ;;  %v837_v11 = vmax.f32 %v552_v0, 0.0  ;;  %v1622_v0 = vld [vmem:[#allocation9 + $0x60] ss:$8 sps:$4 sm:$0xff]   ;;  %1361 = vmatprep.subr.bf16.mxu1 %v1624_v57 }
 0x16a   :  { %v953_v12 = vadd.f32 %v952_v5, %v836_v6 }
 0x16b   :  { %v990_v13 = vadd.f32 %v989_v9, %v837_v11  ;;  %v555_v15 = vpop.f32.mrb[24].mxu0  ;;  %v2050_v23 = vpop.f32.mrb[24].mxu1  ;;  %1362 = vmatpush1.bf16.msra.mxu1 %v1622_v0 }
 0x16c   :  { %v556_v20 = vadd.f32 %v555_v15, %v1971_v48  ;;  %v557_v22 = vpop.f32.mrb[25].mxu0  ;;  %v2053_v27 = vpop.f32.mrb[25].mxu1 }
 0x16d   :  { %v558_v24 = vadd.f32 %v557_v22, %v1975_v49  ;;  %v559_v26 = vpop.f32.mrb[26].mxu0  ;;  %v2056_v34 = vpop.f32.mrb[26].mxu1 }
 0x16e   :  { %v838_v30 = vmax.f32 %v556_v20, 0.0  ;;  %v560_v31 = vadd.f32 %v559_v26, %v1971_v48  ;;  %v561_v33 = vpop.f32.mrb[27].mxu0  ;;  %v2059_v38 = vpop.f32.mrb[27].mxu1  ;;  %v1627_v26 = vld [vmem:[#allocation9 + $0x74] ss:$8 sps:$4 sm:$0xff]  }
 0x16f   :  { %v839_v35 = vmax.f32 %v558_v24, 0.0  ;;  %v562_v37 = vadd.f32 %v561_v33, %v1975_v49  ;;  %v1625_v24 = vld [vmem:[#allocation9 + $0x70] ss:$8 sps:$4 sm:$0xff]   ;;  %1363 = vmatprep.subr.bf16.mxu1 %v1627_v26 }
 0x170   :  { %v954_v41 = vadd.f32 %v953_v12, %v838_v30  ;;  %v840_v43 = vmax.f32 %v560_v31, 0.0  ;;  %1364 = vmatpush1.bf16.msra.mxu1 %v1625_v24 }
 0x171   :  { %v991_v50 = vadd.f32 %v990_v13, %v839_v35  ;;  %v841_v51 = vmax.f32 %v562_v37, 0.0  ;;  %v1630_v37 = vld [vmem:[#allocation9 + $0x84] ss:$8 sps:$4 sm:$0xff]  }
 0x172   :  { %v955_v54 = vadd.f32 %v954_v41, %v840_v43  ;;  %1365 = vmatprep.subr.bf16.mxu1 %v1630_v37 }
 0x173   :  { %v992_v58 = vadd.f32 %v991_v50, %v841_v51  ;;  %v565_v63 = vpop.f32.mrb[28].mxu0  ;;  %v2062_v6 = vpop.f32.mrb[28].mxu1 }
 0x174   :  { %v566_v3 = vadd.f32 %v565_v63, %v1971_v48  ;;  %v567_v5 = vpop.f32.mrb[29].mxu0  ;;  %v2065_v11 = vpop.f32.mrb[29].mxu1  ;;  %1366 = vmatpush1.bf16.msra.mxu1 %v1628_v44 }
 0x175   :  { %v568_v8 = vadd.f32 %v567_v5, %v1975_v49  ;;  %v569_v9 = vpop.f32.mrb[30].mxu0  ;;  %v2068_v16 = vpop.f32.mrb[30].mxu1 }
 0x176   :  { %v842_v12 = vmax.f32 %v566_v3, 0.0  ;;  %v570_v13 = vadd.f32 %v569_v9, %v1971_v48  ;;  %v571_v15 = vpop.f32.mrb[31].mxu0  ;;  %v2071_v22 = vpop.f32.mrb[31].mxu1 }
 0x177   :  { %v843_v19 = vmax.f32 %v568_v8, 0.0  ;;  %v572_v20 = vadd.f32 %v571_v15, %v1975_v49 }
 0x178   :  { %v956_v30 = vadd.f32 %v955_v54, %v842_v12  ;;  %v844_v31 = vmax.f32 %v570_v13, 0.0 }
 0x179   :  { %v993_v33 = vadd.f32 %v992_v58, %v843_v19  ;;  %v845_v35 = vmax.f32 %v572_v20, 0.0  ;;  %v1633_v58 = vld [vmem:[#allocation9 + $0x94] ss:$8 sps:$4 sm:$0xff]   ;;  %v1631_v19 = vld [vmem:[#allocation9 + $0x90] ss:$8 sps:$4 sm:$0xff]  }
 0x17a   :  { %v957_v40 = vadd.f32 %v956_v30, %v844_v31  ;;  %1367 = vmatprep.subr.bf16.mxu1 %v1633_v58 }
 0x17b   :  { %v994_v41 = vadd.f32 %v993_v33, %v845_v35  ;;  %v575_v43 = vpop.f32.mrb[32].mxu0  ;;  %v2074_v57 = vpop.f32.mrb[32].mxu1  ;;  %1368 = vmatpush1.bf16.msra.mxu1 %v1631_v19 }
 0x17c   :  { %v576_v50 = vadd.f32 %v575_v43, %v1971_v48  ;;  %v577_v51 = vpop.f32.mrb[33].mxu0  ;;  %v2077_v54 = vpop.f32.mrb[33].mxu1  ;;  %1369 = vmatprep.subr.bf16.mxu1 %v1636_v45  ;;  %v1640_v45 = vld [vmem:[#allocation9 + $0xc0] ss:$8 sps:$4 sm:$0xff]  }
 0x17d   :  { %v578_v63 = vadd.f32 %v577_v51, %v1975_v49  ;;  %v579_v0 = vpop.f32.mrb[34].mxu0  ;;  %v2080_v9 = vpop.f32.mrb[34].mxu1 }
 0x17e   :  { %v846_v3 = vmax.f32 %v576_v50, 0.0  ;;  %v580_v5 = vadd.f32 %v579_v0, %v1971_v48  ;;  %v581_v8 = vpop.f32.mrb[35].mxu0  ;;  %v2083_v15 = vpop.f32.mrb[35].mxu1 }
 0x17f   :  { %v847_v12 = vmax.f32 %v578_v63, 0.0  ;;  %v582_v13 = vadd.f32 %v581_v8, %v1975_v49 }
 0x180   :  { %v958_v20 = vadd.f32 %v957_v40, %v846_v3  ;;  %v848_v24 = vmax.f32 %v580_v5, 0.0 }
 0x181   :  { %v995_v26 = vadd.f32 %v994_v41, %v847_v12  ;;  %v849_v30 = vmax.f32 %v582_v13, 0.0 }
 0x182   :  { %v959_v31 = vadd.f32 %v958_v20, %v848_v24 }
 0x183   :  { %v996_v33 = vadd.f32 %v995_v26, %v849_v30  ;;  %v585_v35 = vpop.f32.mrb[36].mxu0  ;;  %v2086_v50 = vpop.f32.mrb[36].mxu1 }
 0x184   :  { %v586_v37 = vadd.f32 %v585_v35, %v1971_v48  ;;  %v587_v43 = vpop.f32.mrb[37].mxu0  ;;  %v2089_v0 = vpop.f32.mrb[37].mxu1 }
 0x185   :  { %v588_v51 = vadd.f32 %v587_v43, %v1975_v49  ;;  %v589_v63 = vpop.f32.mrb[38].mxu0  ;;  %v2092_v41 = vpop.f32.mrb[38].mxu1 }
 0x186   :  { %v850_v44 = vmax.f32 %v586_v37, 0.0  ;;  %v590_v40 = vadd.f32 %v589_v63, %v1971_v48  ;;  %v591_v58 = vpop.f32.mrb[39].mxu0  ;;  %v2095_v8 = vpop.f32.mrb[39].mxu1 }
 0x187   :  { %v851_v3 = vmax.f32 %v588_v51, 0.0  ;;  %v592_v5 = vadd.f32 %v591_v58, %v1975_v49  ;;  %2325 = vst [vmem:[#allocation18_spill] sm:$0xff] %v2095_v8  ;;  %v1634_v58 = vld [vmem:[#allocation9 + $0xa0] ss:$8 sps:$4 sm:$0xff]  }
 0x188   :  { %v960_v12 = vadd.f32 %v959_v31, %v850_v44  ;;  %v852_v13 = vmax.f32 %v590_v40, 0.0  ;;  %1370 = vmatpush1.bf16.msra.mxu1 %v1634_v58 }
 0x189   :  { %v997_v19 = vadd.f32 %v996_v33, %v851_v3  ;;  %v853_v20 = vmax.f32 %v592_v5, 0.0 }
 0x18a   :  { %v961_v24 = vadd.f32 %v960_v12, %v852_v13  ;;  %v1639_v12 = vld [vmem:[#allocation9 + $0xb4] ss:$8 sps:$4 sm:$0xff]   ;;  %v1804_v13 = vmov 0.0  }
 0x18b   :  { %v998_v26 = vadd.f32 %v997_v19, %v853_v20  ;;  %v595_v30 = vpop.f32.mrb[40].mxu0  ;;  %v2098_v43 = vpop.f32.mrb[40].mxu1  ;;  %90 = vst [vmem:[#allocation2] sm:$0xf] %v1804_v13  ;;  %1371 = vmatprep.subr.bf16.mxu1 %v1639_v12 }
 0x18c   :  { %v596_v35 = vadd.f32 %v595_v30, %v1971_v48  ;;  %v597_v37 = vpop.f32.mrb[41].mxu0  ;;  %2326 = vst [vmem:[#allocation19_spill] sm:$0xff] %v2098_v43  ;;  %v2101_v51 = vpop.f32.mrb[41].mxu1  ;;  %v1637_v30 = vld [vmem:[#allocation9 + $0xb0] ss:$8 sps:$4 sm:$0xff]  }
 0x18d   :  { %v598_v63 = vadd.f32 %v597_v37, %v1975_v49  ;;  %v599_v47 = vpop.f32.mrb[42].mxu0  ;;  %2327 = vst [vmem:[#allocation20_spill] sm:$0xff] %v2101_v51  ;;  %v2104_v44 = vpop.f32.mrb[42].mxu1  ;;  %1372 = vmatpush1.bf16.msra.mxu1 %v1637_v30 }
 0x18e   :  { %v854_v42 = vmax.f32 %v596_v35, 0.0  ;;  %v600_v31 = vadd.f32 %v599_v47, %v1971_v48  ;;  %v601_v33 = vpop.f32.mrb[43].mxu0  ;;  %2328 = vst [vmem:[#allocation21_spill] sm:$0xff] %v2104_v44  ;;  %v2107_v5 = vpop.f32.mrb[43].mxu1  ;;  %v1642_v47 = vld [vmem:[#allocation9 + $0xc4] ss:$8 sps:$4 sm:$0xff]  }
 0x18f   :  { %v855_v40 = vmax.f32 %v598_v63, 0.0  ;;  %v602_v3 = vadd.f32 %v601_v33, %v1975_v49  ;;  %2329 = vst [vmem:[#allocation22_spill] sm:$0xff] %v2107_v5  ;;  %1373 = vmatprep.subr.bf16.mxu1 %v1642_v47  ;;  %v1648_v47 = vld [vmem:[#allocation9 + $0xe4] ss:$8 sps:$4 sm:$0xff]  }
 0x190   :  { %v962_v19 = vadd.f32 %v961_v24, %v854_v42  ;;  %v856_v20 = vmax.f32 %v600_v31, 0.0 }
 0x191   :  { %v999_v37 = vadd.f32 %v998_v26, %v855_v40  ;;  %v857_v35 = vmax.f32 %v602_v3, 0.0  ;;  %v1645_v26 = vld [vmem:[#allocation9 + $0xd4] ss:$8 sps:$4 sm:$0xff]   ;;  %1374 = vmatpush1.bf16.msra.mxu1 %v1640_v45 }
 0x192   :  { %v963_v51 = vadd.f32 %v962_v19, %v856_v20  ;;  %1375 = vmatprep.subr.bf16.mxu1 %v1645_v26 }
 0x193   :  { %v1000_v43 = vadd.f32 %v999_v37, %v857_v35  ;;  %v605_v44 = vpop.f32.mrb[44].mxu0  ;;  %v2110_v8 = vpop.f32.mrb[44].mxu1  ;;  %v1643_v37 = vld [vmem:[#allocation9 + $0xd0] ss:$8 sps:$4 sm:$0xff]  }
 0x194   :  { %v606_v63 = vadd.f32 %v605_v44, %v1971_v48  ;;  %v607_v33 = vpop.f32.mrb[45].mxu0  ;;  %2330 = vst [vmem:[#allocation23_spill] sm:$0xff] %v2110_v8  ;;  %v2113_v24 = vpop.f32.mrb[45].mxu1 }
 0x195   :  { %v608_v13 = vadd.f32 %v607_v33, %v1975_v49  ;;  %v609_v42 = vpop.f32.mrb[46].mxu0  ;;  %2331 = vst [vmem:[#allocation24_spill] sm:$0xff] %v2113_v24  ;;  %v2116_v3 = vpop.f32.mrb[46].mxu1  ;;  %1376 = vmatpush1.bf16.msra.mxu1 %v1643_v37 }
 0x196   :  { %v858_v58 = vmax.f32 %v606_v63, 0.0  ;;  %v610_v31 = vadd.f32 %v609_v42, %v1971_v48  ;;  %v611_v40 = vpop.f32.mrb[47].mxu0  ;;  %2332 = vst [vmem:[#allocation25_spill] sm:$0xff] %v2116_v3  ;;  %v2119_v19 = vpop.f32.mrb[47].mxu1  ;;  %1377 = vmatprep.subr.bf16.mxu1 %v1648_v47 }
 0x197   :  { %v859_v12 = vmax.f32 %v608_v13, 0.0  ;;  %v612_v44 = vadd.f32 %v611_v40, %v1975_v49  ;;  %2333 = vst [vmem:[#allocation26_spill] sm:$0xff] %v2119_v19  ;;  %v1646_v13 = vld [vmem:[#allocation9 + $0xe0] ss:$8 sps:$4 sm:$0xff]  }
 0x198   :  { %v964_v20 = vadd.f32 %v963_v51, %v858_v58  ;;  %v860_v30 = vmax.f32 %v610_v31, 0.0 }
 0x199   :  { %v1001_v35 = vadd.f32 %v1000_v43, %v859_v12  ;;  %v861_v33 = vmax.f32 %v612_v44, 0.0  ;;  %v1651_v43 = vld [vmem:[#allocation9 + $0xf4] ss:$8 sps:$4 sm:$0xff]   ;;  %1378 = vmatpush1.bf16.msra.mxu1 %v1646_v13 }
 0x19a   :  { %v965_v24 = vadd.f32 %v964_v20, %v860_v30  ;;  %1379 = vmatprep.subr.bf16.mxu1 %v1651_v43 }
 0x19b   :  { %v1002_v63 = vadd.f32 %v1001_v35, %v861_v33  ;;  %v615_v8 = vpop.f32.mrb[48].mxu0  ;;  %v2122_v3 = vpop.f32.mrb[48].mxu1 }
 0x19c   :  { %v616_v42 = vadd.f32 %v615_v8, %v1971_v48  ;;  %v617_v5 = vpop.f32.mrb[49].mxu0  ;;  %2334 = vst [vmem:[#allocation27_spill] sm:$0xff] %v2122_v3  ;;  %v2125_v58 = vpop.f32.mrb[49].mxu1 }
 0x19d   :  { %v618_v40 = vadd.f32 %v617_v5, %v1975_v49  ;;  %v619_v51 = vpop.f32.mrb[50].mxu0  ;;  %2335 = vst [vmem:[#allocation28_spill] sm:$0xff] %v2125_v58  ;;  %v2128_v12 = vpop.f32.mrb[50].mxu1  ;;  %v1649_v5 = vld [vmem:[#allocation9 + $0xf0] ss:$8 sps:$4 sm:$0xff]  }
 0x19e   :  { %v862_v45 = vmax.f32 %v616_v42, 0.0  ;;  %v620_v26 = vadd.f32 %v619_v51, %v1971_v48  ;;  %v621_v31 = vpop.f32.mrb[51].mxu0  ;;  %v2131_v20 = vpop.f32.mrb[51].mxu1  ;;  %1380 = vmatpush1.bf16.msra.mxu1 %v1649_v5 }
 0x19f   :  { %v863_v44 = vmax.f32 %v618_v40, 0.0  ;;  %v622_v8 = vadd.f32 %v621_v31, %v1975_v49  ;;  %2336 = vst [vmem:[#allocation29_spill] sm:$0xff] %v2131_v20 }
 0x1a0   :  { %v966_v30 = vadd.f32 %v965_v24, %v862_v45  ;;  %v864_v37 = vmax.f32 %v620_v26, 0.0 }
 0x1a1   :  { %v1003_v35 = vadd.f32 %v1002_v63, %v863_v44  ;;  %v865_v33 = vmax.f32 %v622_v8, 0.0 }
 0x1a2   :  { %v967_v47 = vadd.f32 %v966_v30, %v864_v37 }
 0x1a3   :  { %v1004_v58 = vadd.f32 %v1003_v35, %v865_v33  ;;  %v625_v42 = vpop.f32.mrb[52].mxu0  ;;  %v2134_v19 = vpop.f32.mrb[52].mxu1 }
 0x1a4   :  { %v626_v51 = vadd.f32 %v625_v42, %v1971_v48  ;;  %v627_v3 = vpop.f32.mrb[53].mxu0  ;;  %2337 = vst [vmem:[#allocation30_spill] sm:$0xff] %v2134_v19  ;;  %v2137_v20 = vpop.f32.mrb[53].mxu1 }
 0x1a5   :  { %v628_v40 = vadd.f32 %v627_v3, %v1975_v49  ;;  %v629_v31 = vpop.f32.mrb[54].mxu0  ;;  %2338 = vst [vmem:[#allocation31_spill] sm:$0xff] %v2137_v20  ;;  %v2140_v45 = vpop.f32.mrb[54].mxu1 }
 0x1a6   :  { %v866_v24 = vmax.f32 %v626_v51, 0.0  ;;  %v630_v13 = vadd.f32 %v629_v31, %v1971_v48  ;;  %v631_v63 = vpop.f32.mrb[55].mxu0  ;;  %2339 = vst [vmem:[#allocation32_spill] sm:$0xff] %v2140_v45  ;;  %v2143_v44 = vpop.f32.mrb[55].mxu1 }
 0x1a7   :  { %v867_v43 = vmax.f32 %v628_v40, 0.0  ;;  %v632_v26 = vadd.f32 %v631_v63, %v1975_v49  ;;  %2340 = vst [vmem:[#allocation33_spill] sm:$0xff] %v2143_v44 }
 0x1a8   :  { %v968_v8 = vadd.f32 %v967_v47, %v866_v24  ;;  %v868_v30 = vmax.f32 %v630_v13, 0.0 }
 0x1a9   :  { %v1005_v37 = vadd.f32 %v1004_v58, %v867_v43  ;;  %v869_v5 = vmax.f32 %v632_v26, 0.0 }
 0x1aa   :  { %v969_v35 = vadd.f32 %v968_v8, %v868_v30 }
 0x1ab   :  { %v1006_v3 = vadd.f32 %v1005_v37, %v869_v5  ;;  %v635_v33 = vpop.f32.mrb[56].mxu0  ;;  %v2146_v20 = vpop.f32.mrb[56].mxu1 }
 0x1ac   :  { %v636_v42 = vadd.f32 %v635_v33, %v1971_v48  ;;  %v637_v51 = vpop.f32.mrb[57].mxu0  ;;  %2341 = vst [vmem:[#allocation34_spill] sm:$0xff] %v2146_v20  ;;  %v2149_v40 = vpop.f32.mrb[57].mxu1 }
 0x1ad   :  { %v638_v31 = vadd.f32 %v637_v51, %v1975_v49  ;;  %v639_v45 = vpop.f32.mrb[58].mxu0  ;;  %2342 = vst [vmem:[#allocation35_spill] sm:$0xff] %v2149_v40  ;;  %v2152_v24 = vpop.f32.mrb[58].mxu1 }
 0x1ae   :  { %v870_v63 = vmax.f32 %v636_v42, 0.0  ;;  %v640_v44 = vadd.f32 %v639_v45, %v1971_v48  ;;  %v641_v47 = vpop.f32.mrb[59].mxu0  ;;  %2343 = vst [vmem:[#allocation36_spill] sm:$0xff] %v2152_v24  ;;  %v2155_v43 = vpop.f32.mrb[59].mxu1 }
 0x1af   :  { %v871_v58 = vmax.f32 %v638_v31, 0.0  ;;  %v642_v13 = vadd.f32 %v641_v47, %v1975_v49  ;;  %2344 = vst [vmem:[#allocation37_spill] sm:$0xff] %v2155_v43 }
 0x1b0   :  { %v970_v26 = vadd.f32 %v969_v35, %v870_v63  ;;  %v872_v8 = vmax.f32 %v640_v44, 0.0 }
 0x1b1   :  { %v1007_v30 = vadd.f32 %v1006_v3, %v871_v58  ;;  %v873_v37 = vmax.f32 %v642_v13, 0.0 }
 0x1b2   :  { %v971_v5 = vadd.f32 %v970_v26, %v872_v8 }
 0x1b3   :  { %v1008_v33 = vadd.f32 %v1007_v30, %v873_v37  ;;  %v645_v51 = vpop.f32.mrb[60].mxu0 }
 0x1b4   :  { %v646_v40 = vadd.f32 %v645_v51, %v1971_v48  ;;  %v647_v42 = vpop.f32.mrb[61].mxu0 }
 0x1b5   :  { %v648_v45 = vadd.f32 %v647_v42, %v1975_v49  ;;  %v649_v20 = vpop.f32.mrb[62].mxu0 }
 0x1b6   :  { %v874_v19 = vmax.f32 %v646_v40, 0.0  ;;  %v650_v31 = vadd.f32 %v649_v20, %v1971_v48  ;;  %v651_v24 = vpop.f32.mrb[63].mxu0  ;;  %v666_v20 = vadd.f32 %v1978_v53, %v1971_v48 }
 0x1b7   :  { %v875_v47 = vmax.f32 %v648_v45, 0.0  ;;  %v652_v43 = vadd.f32 %v651_v24, %v1975_v49 }
 0x1b8   :  { %v972_v35 = vadd.f32 %v971_v5, %v874_v19  ;;  %v876_v44 = vmax.f32 %v650_v31, 0.0  ;;  %v670_v31 = vadd.f32 %v1984_v59, %v1971_v48 }
 0x1b9   :  { %v1009_v3 = vadd.f32 %v1008_v33, %v875_v47  ;;  %v877_v63 = vmax.f32 %v652_v43, 0.0  ;;  %v668_v43 = vadd.f32 %v1981_v56, %v1975_v49 }
 0x1ba   :  { %v973_v58 = vadd.f32 %v972_v35, %v876_v44 }
 0x1bb   :  { %v1010_v13 = vadd.f32 %v1009_v3, %v877_v63  ;;  %v655_v26 = vpop.f32.mrb[64].mxu0  ;;  %v672_v3 = vadd.f32 %v1987_v61, %v1975_v49 }
 0x1bc   :  { %v974_v8 = vrot.slane %v973_v58, 4  ;;  %v656_v30 = vadd.f32 %v655_v26, %v1971_v48  ;;  %v657_v37 = vpop.f32.mrb[65].mxu0  ;;  %v882_v26 = vmax.f32 %v666_v20, 0.0  ;;  %v682_v20 = vadd.f32 %v1999_v17, %v1975_v49 }
 0x1bd   :  { %v1011_v51 = vrot.slane %v1010_v13, 4  ;;  %v658_v40 = vadd.f32 %v657_v37, %v1975_v49  ;;  %v659_v42 = vpop.f32.mrb[66].mxu0  ;;  %v883_v37 = vmax.f32 %v668_v43, 0.0  ;;  %v686_v43 = vadd.f32 %v2002_v29, %v1971_v48 }
 0x1be   :  { %v975_v45 = vadd.f32 %v974_v8, %v973_v58  ;;  %v660_v19 = vadd.f32 %v659_v42, %v1971_v48  ;;  %v661_v24 = vpop.f32.mrb[67].mxu0  ;;  %v878_v35 = vmax.f32 %v656_v30, 0.0  ;;  %v676_v8 = vadd.f32 %v1990_v7, %v1971_v48 }
 0x1bf   :  { %v1012_v5 = vadd.f32 %v1011_v51, %v1010_v13  ;;  %v662_v33 = vadd.f32 %v661_v24, %v1975_v49  ;;  %v879_v63 = vmax.f32 %v658_v40, 0.0  ;;  %v678_v51 = vadd.f32 %v1993_v10, %v1975_v49 }
 0x1c0   :  { %v976_v47 = vrot.slane %v975_v45, 2  ;;  %v880_v44 = vmax.f32 %v660_v19, 0.0  ;;  %v884_v30 = vmax.f32 %v670_v31, 0.0  ;;  %v680_v19 = vadd.f32 %v1996_v14, %v1971_v48 }
 0x1c1   :  { %v1013_v53 = vrot.slane %v1012_v5, 2  ;;  %v881_v58 = vmax.f32 %v662_v33, 0.0  ;;  %v885_v40 = vmax.f32 %v672_v3, 0.0  ;;  %v688_v31 = vadd.f32 %v2005_v32, %v1975_v49 }
 0x1c2   :  { %v977_v56 = vadd.f32 %v976_v47, %v975_v45  ;;  %v1017_v13 = vadd.f32 %v880_v44, %v878_v35  ;;  %v886_v45 = vmax.f32 %v676_v8, 0.0  ;;  %v888_v44 = vmax.f32 %v680_v19, 0.0 }
 0x1c3   :  { %v1014_v59 = vadd.f32 %v1013_v53, %v1012_v5  ;;  %v1054_v42 = vadd.f32 %v881_v58, %v879_v63  ;;  %v887_v5 = vmax.f32 %v678_v51, 0.0  ;;  %v690_v17 = vadd.f32 %v2008_v36, %v1971_v48 }
 0x1c4   :  { %v978_v61 = vrot.slane %v977_v56, 1  ;;  %v1018_v24 = vadd.f32 %v1017_v13, %v882_v26  ;;  %v889_v53 = vmax.f32 %v682_v20, 0.0  ;;  %v692_v63 = vadd.f32 %v2011_v39, %v1975_v49 }
 0x1c5   :  { %v1015_v33 = vrot.slane %v1014_v59, 1  ;;  %v1055_v7 = vadd.f32 %v1054_v42, %v883_v37  ;;  %v890_v26 = vmax.f32 %v686_v43, 0.0  ;;  %v696_v32 = vadd.f32 %v2014_v55, %v1971_v48 }
 0x1c6   :  { %v2183_v47 = vadd.f32 %v978_v61, %v977_v56  ;;  %v1019_v10 = vadd.f32 %v1018_v24, %v884_v30  ;;  %v891_v56 = vmax.f32 %v688_v31, 0.0  ;;  %v698_v13 = vadd.f32 %v2017_v60, %v1975_v49 }
 0x1c7   :  { %v2187_v14 = vadd.f32 %v1015_v33, %v1014_v59  ;;  %v1056_v35 = vadd.f32 %v1055_v7, %v885_v40  ;;  %v892_v36 = vmax.f32 %v690_v17, 0.0  ;;  %v700_v51 = vadd.f32 %v2020_v1, %v1971_v48 }
 0x1c8   :  { %v1020_v3 = vadd.f32 %v1019_v10, %v886_v45  ;;  %v893_v39 = vmax.f32 %v692_v63, 0.0  ;;  %v702_v42 = vadd.f32 %v2023_v4, %v1975_v49  ;;  %v894_v19 = vmax.f32 %v696_v32, 0.0 }
 0x1c9   :  { %v1095_v29 = vcombine.low %v2183_v47, %v2187_v14  ;;  %v1057_v58 = vadd.f32 %v1056_v35, %v887_v5  ;;  %v706_v55 = vadd.f32 %v2026_v18, %v1971_v48  ;;  %v895_v24 = vmax.f32 %v698_v13, 0.0  ;;  %v1177_v47 = vld [vmem:[#allocation11] sm:$0x3] }
 0x1ca   :  { %v1021_v8 = vadd.f32 %v1020_v3, %v888_v44  ;;  %v708_v60 = vadd.f32 %v2029_v21, %v1975_v49  ;;  %v896_v20 = vmax.f32 %v700_v51, 0.0  ;;  %v710_v1 = vadd.f32 %v2032_v25, %v1971_v48 }
 0x1cb   :  { %v1058_v37 = vadd.f32 %v1057_v58, %v889_v53  ;;  %v897_v7 = vmax.f32 %v702_v42, 0.0  ;;  %v712_v4 = vadd.f32 %v2035_v28, %v1975_v49  ;;  %v898_v43 = vmax.f32 %v706_v55, 0.0 }
 0x1cc   :  { %v1022_v59 = vadd.f32 %v1021_v8, %v890_v26  ;;  %v716_v18 = vadd.f32 %v2038_v46, %v1971_v48  ;;  %v899_v5 = vmax.f32 %v708_v60, 0.0  ;;  %v718_v21 = vadd.f32 %v2041_v52, %v1975_v49 }
 0x1cd   :  { %v1059_v30 = vadd.f32 %v1058_v37, %v891_v56  ;;  %v900_v35 = vmax.f32 %v710_v1, 0.0  ;;  %v720_v25 = vadd.f32 %v2044_v62, %v1971_v48  ;;  %v901_v17 = vmax.f32 %v712_v4, 0.0 }
 0x1ce   :  { %v1023_v61 = vadd.f32 %v1022_v59, %v892_v36  ;;  %v722_v28 = vadd.f32 %v2047_v2, %v1975_v49  ;;  %v902_v53 = vmax.f32 %v716_v18, 0.0  ;;  %v726_v46 = vadd.f32 %v2050_v23, %v1971_v48 }
 0x1cf   :  { %v1060_v40 = vadd.f32 %v1059_v30, %v893_v39  ;;  %v903_v58 = vmax.f32 %v718_v21, 0.0  ;;  %v728_v52 = vadd.f32 %v2053_v27, %v1975_v49  ;;  %v904_v32 = vmax.f32 %v720_v25, 0.0 }
 0x1d0   :  { %v1024_v33 = vadd.f32 %v1023_v61, %v894_v19  ;;  %v730_v62 = vadd.f32 %v2056_v34, %v1971_v48  ;;  %v905_v56 = vmax.f32 %v722_v28, 0.0  ;;  %v732_v2 = vadd.f32 %v2059_v38, %v1975_v49 }
 0x1d1   :  { %v1061_v45 = vadd.f32 %v1060_v40, %v895_v24  ;;  %v906_v37 = vmax.f32 %v726_v46, 0.0  ;;  %v736_v23 = vadd.f32 %v2062_v6, %v1971_v48  ;;  %v907_v51 = vmax.f32 %v728_v52, 0.0 }
 0x1d2   :  { %v1025_v10 = vadd.f32 %v1024_v33, %v896_v20  ;;  %v738_v27 = vadd.f32 %v2065_v11, %v1975_v49  ;;  %v908_v39 = vmax.f32 %v730_v62, 0.0  ;;  %v740_v34 = vadd.f32 %v2068_v16, %v1971_v48 }
 0x1d3   :  { %v1062_v31 = vadd.f32 %v1061_v45, %v897_v7  ;;  %v909_v30 = vmax.f32 %v732_v2, 0.0  ;;  %v742_v38 = vadd.f32 %v2071_v22, %v1975_v49  ;;  %v910_v55 = vmax.f32 %v736_v23, 0.0  ;;  %v2351_v23 = vld [vmem:[#allocation24_spill] sm:$0xff] }
 0x1d4   :  { %v1026_v44 = vadd.f32 %v1025_v10, %v898_v43  ;;  %v746_v6 = vadd.f32 %v2074_v57, %v1971_v48  ;;  %v911_v24 = vmax.f32 %v738_v27, 0.0  ;;  %v748_v11 = vadd.f32 %v2077_v54, %v1975_v49 }
 0x1d5   :  { %v1063_v3 = vadd.f32 %v1062_v31, %v899_v5  ;;  %v912_v40 = vmax.f32 %v740_v34, 0.0  ;;  %v750_v16 = vadd.f32 %v2080_v9, %v1971_v48  ;;  %v913_v1 = vmax.f32 %v742_v38, 0.0  ;;  %v2345_v31 = vld [vmem:[#allocation18_spill] sm:$0xff] }
 0x1d6   :  { %v1027_v63 = vadd.f32 %v1026_v44, %v900_v35  ;;  %v752_v22 = vadd.f32 %v2083_v15, %v1975_v49  ;;  %v914_v4 = vmax.f32 %v746_v6, 0.0  ;;  %v756_v57 = vadd.f32 %v2086_v50, %v1971_v48  ;;  %v2346_v44 = vld [vmem:[#allocation19_spill] sm:$0xff] }
 0x1d7   :  { %v1064_v26 = vadd.f32 %v1063_v3, %v901_v17  ;;  %v915_v43 = vmax.f32 %v748_v11, 0.0  ;;  %v758_v54 = vadd.f32 %v2089_v0, %v1975_v49  ;;  %v916_v10 = vmax.f32 %v750_v16, 0.0  ;;  %v2347_v3 = vld [vmem:[#allocation20_spill] sm:$0xff] }
 0x1d8   :  { %v1028_v8 = vadd.f32 %v1027_v63, %v902_v53  ;;  %v760_v9 = vadd.f32 %v2092_v41, %v1971_v48  ;;  %v917_v21 = vmax.f32 %v752_v22, 0.0  ;;  %v762_v15 = vadd.f32 %v2345_v31, %v1975_v49  ;;  %v2348_v63 = vld [vmem:[#allocation21_spill] sm:$0xff]  ;;  %v2355_v11 = vld [vmem:[#allocation28_spill] sm:$0xff] }
 0x1d9   :  { %v1065_v13 = vadd.f32 %v1064_v26, %v903_v58  ;;  %v918_v25 = vmax.f32 %v756_v57, 0.0  ;;  %v766_v50 = vadd.f32 %v2346_v44, %v1971_v48  ;;  %v919_v28 = vmax.f32 %v758_v54, 0.0  ;;  %v2349_v26 = vld [vmem:[#allocation22_spill] sm:$0xff] }
 0x1da   :  { %v1029_v36 = vadd.f32 %v1028_v8, %v904_v32  ;;  %v768_v0 = vadd.f32 %v2347_v3, %v1975_v49  ;;  %v920_v46 = vmax.f32 %v760_v9, 0.0  ;;  %v770_v41 = vadd.f32 %v2348_v63, %v1971_v48  ;;  %v2358_v9 = vld [vmem:[#allocation31_spill] sm:$0xff] }
 0x1db   :  { %v1066_v59 = vadd.f32 %v1065_v13, %v905_v56  ;;  %v921_v52 = vmax.f32 %v762_v15, 0.0  ;;  %v772_v32 = vadd.f32 %v2349_v26, %v1975_v49  ;;  %v922_v8 = vmax.f32 %v766_v50, 0.0  ;;  %v2350_v56 = vld [vmem:[#allocation23_spill] sm:$0xff]  ;;  %v2359_v15 = vld [vmem:[#allocation32_spill] sm:$0xff] }
 0x1dc   :  { %v1030_v42 = vadd.f32 %v1029_v36, %v906_v37  ;;  %v776_v2 = vadd.f32 %v2350_v56, %v1971_v48  ;;  %v923_v37 = vmax.f32 %v768_v0, 0.0  ;;  %v778_v36 = vadd.f32 %v2351_v23, %v1975_v49  ;;  %v2362_v3 = vld [vmem:[#allocation35_spill] sm:$0xff] }
 0x1dd   :  { %v1067_v19 = vadd.f32 %v1066_v59, %v907_v51  ;;  %v924_v27 = vmax.f32 %v770_v41, 0.0  ;;  %v2352_v59 = vld [vmem:[#allocation25_spill] sm:$0xff]  ;;  %v808_v0 = vadd.f32 %v2362_v3, %v1975_v49 }
 0x1de   :  { %v1031_v61 = vadd.f32 %v1030_v42, %v908_v39  ;;  %v780_v39 = vadd.f32 %v2352_v59, %v1971_v48  ;;  %v925_v42 = vmax.f32 %v772_v32, 0.0  ;;  %v2363_v32 = vld [vmem:[#allocation36_spill] sm:$0xff] }
 0x1df   :  { %v1068_v60 = vadd.f32 %v1067_v19, %v909_v30  ;;  %v2353_v30 = vld [vmem:[#allocation26_spill] sm:$0xff] }
 0x1e0   :  { %v1032_v20 = vadd.f32 %v1031_v61, %v910_v55  ;;  %v782_v38 = vadd.f32 %v2353_v30, %v1975_v49  ;;  %v926_v55 = vmax.f32 %v776_v2, 0.0  ;;  %v2354_v61 = vld [vmem:[#allocation27_spill] sm:$0xff]  ;;  %v928_v16 = vmax.f32 %v780_v39, 0.0 }
 0x1e1   :  { %v1069_v33 = vadd.f32 %v1068_v60, %v911_v24  ;;  %v786_v6 = vadd.f32 %v2354_v61, %v1971_v48  ;;  %v927_v60 = vmax.f32 %v778_v36, 0.0  ;;  %v939_v2 = vmax.f32 %v808_v0, 0.0 }
 0x1e2   :  { %v1033_v7 = vadd.f32 %v1032_v20, %v912_v40  ;;  %v788_v40 = vadd.f32 %v2355_v11, %v1975_v49  ;;  %v929_v22 = vmax.f32 %v782_v38, 0.0 }
 0x1e3   :  { %v1070_v45 = vadd.f32 %v1069_v33, %v913_v1  ;;  %v790_v1 = vadd.f32 %v2128_v12, %v1971_v48  ;;  %v800_v12 = vadd.f32 %v2359_v15, %v1971_v48 }
 0x1e4   :  { %v1034_v18 = vadd.f32 %v1033_v7, %v914_v4  ;;  %v2356_v7 = vld [vmem:[#allocation29_spill] sm:$0xff] }
 0x1e5   :  { %v1071_v5 = vadd.f32 %v1070_v45, %v915_v43  ;;  %v792_v4 = vadd.f32 %v2356_v7, %v1975_v49  ;;  %v930_v45 = vmax.f32 %v786_v6, 0.0  ;;  %v2357_v43 = vld [vmem:[#allocation30_spill] sm:$0xff]  ;;  %v932_v31 = vmax.f32 %v790_v1, 0.0 }
 0x1e6   :  { %v1035_v35 = vadd.f32 %v1034_v18, %v916_v10  ;;  %v796_v54 = vadd.f32 %v2357_v43, %v1971_v48  ;;  %v931_v10 = vmax.f32 %v788_v40, 0.0  ;;  %v1805_v6 = vmov 1983009808  }
 0x1e7   :  { %v1072_v17 = vadd.f32 %v1071_v5, %v917_v21  ;;  %v798_v5 = vadd.f32 %v2358_v9, %v1975_v49  ;;  %v933_v50 = vmax.f32 %v792_v4, 0.0 }
 0x1e8   :  { %v1036_v53 = vadd.f32 %v1035_v35, %v918_v25  ;;  %v2360_v35 = vld [vmem:[#allocation34_spill] sm:$0xff] }
 0x1e9   :  { %v1073_v58 = vadd.f32 %v1072_v17, %v919_v28  ;;  %v806_v25 = vadd.f32 %v2360_v35, %v1971_v48  ;;  %v2361_v17 = vld [vmem:[#allocation33_spill] sm:$0xff]  ;;  %v935_v41 = vmax.f32 %v798_v5, 0.0 }
 0x1ea   :  { %v1037_v62 = vadd.f32 %v1036_v53, %v920_v46  ;;  %v802_v28 = vadd.f32 %v2361_v17, %v1975_v49  ;;  %v934_v46 = vmax.f32 %v796_v54, 0.0  ;;  %v942_v54 = vld [vmem:[#allocation2] sm:$0xf] }
 0x1eb   :  { %v1074_v13 = vadd.f32 %v1073_v58, %v921_v52  ;;  %v936_v52 = vmax.f32 %v800_v12, 0.0  ;;  %v938_v26 = vmax.f32 %v806_v25, 0.0 }
 0x1ec   :  { %v1038_v51 = vadd.f32 %v1037_v62, %v922_v8  ;;  %v810_v62 = vadd.f32 %v2363_v32, %v1971_v48  ;;  %v937_v56 = vmax.f32 %v802_v28, 0.0 }
 0x1ed   :  { %v1075_v34 = vadd.f32 %v1074_v13, %v923_v37  ;;  %v2364_v13 = vld [vmem:[#allocation37_spill] sm:$0xff] }
 0x1ee   :  { %v1039_v19 = vadd.f32 %v1038_v51, %v924_v27  ;;  %v812_v37 = vadd.f32 %v2364_v13, %v1975_v49  ;;  %v940_v27 = vmax.f32 %v810_v62, 0.0 }
 0x1ef   :  { %v1076_v24 = vadd.f32 %v1075_v34, %v925_v42 }
 0x1f0   :  { %v1040_v20 = vadd.f32 %v1039_v19, %v926_v55  ;;  %v941_v39 = vmax.f32 %v812_v37, 0.0 }
 0x1f1   :  { %v1077_v33 = vadd.f32 %v1076_v24, %v927_v60  ;;  %v1097_v24 = vunpack.c.l.s4 %v1805_v6 }
 0x1f2   :  { %v1041_v57 = vadd.f32 %v1040_v20, %v928_v16 }
 0x1f3   :  { %v1078_v18 = vadd.f32 %v1077_v33, %v929_v22  ;;  %v1098_v20 = vunpack.c.0.s8 %v1097_v24  ;;  %v2365_v22 = vld [vmem:[#allocation17_spill] sm:$0xff] }
 0x1f4   :  { %v1042_v21 = vadd.f32 %v1041_v57, %v930_v45  ;;  %v2366_v14 = vsub.s32 0, %v2365_v22 }
 0x1f5   :  { %v1079_v44 = vadd.f32 %v1078_v18, %v931_v10  ;;  %v1101_v7 = vsub.s32 %v1098_v20, %v2365_v22 }
 0x1f6   :  { %v1043_v53 = vadd.f32 %v1042_v21, %v932_v31 }
 0x1f7   :  { %v1080_v63 = vadd.f32 %v1079_v44, %v933_v50  ;;  %v1102_v57 = vrot.slane %v1095_v29, %v1101_v7  ;;  %v1182_v29 = vrot.slane %v1177_v47, %v2366_v14  ;;  %v2367_v44 = vsub.s32 1, %v2365_v22 }
 0x1f8   :  { %v1044_v58 = vadd.f32 %v1043_v53, %v934_v46 }
 0x1f9   :  { %v1081_v8 = vadd.f32 %v1080_v63, %v935_v41  ;;  %v1186_v50 = vrot.slane %v1177_v47, %v2367_v44 }
 0x1fa   :  { %v1045_v23 = vadd.f32 %v1044_v58, %v936_v52 }
 0x1fb   :  { %v1082_v36 = vadd.f32 %v1081_v8, %v937_v56  ;;  %v1806_v8 = vmov 1966171168  }
 0x1fc   :  { %v1046_v51 = vadd.f32 %v1045_v23, %v938_v26  ;;  %v1407_v56 = vunpack.c.l.s4 %v1806_v8 }
 0x1fd   :  { %v1083_v59 = vadd.f32 %v1082_v36, %v939_v2 }
 0x1fe   :  { %v1047_v34 = vadd.f32 %v1046_v51, %v940_v27  ;;  %v1408_v2 = vunpack.c.0.s8 %v1407_v56 }
 0x1ff   :  { %v1084_v42 = vadd.f32 %v1083_v59, %v941_v39 }
 0x200   :  { %v1048_v30 = vrot.slane %v1047_v34, 4  ;;  %v1411_v36 = vsub.s32 %v1408_v2, %v2365_v22 }
 0x201   :  { %v1085_v38 = vrot.slane %v1084_v42, 4 }
 0x202   :  { %v1049_v19 = vadd.f32 %v1048_v30, %v1047_v34 }
 0x203   :  { %v1086_v55 = vadd.f32 %v1085_v38, %v1084_v42 }
 0x204   :  { %v1050_v61 = vrot.slane %v1049_v19, 2 }
 0x205   :  { %v1087_v48 = vrot.slane %v1086_v55, 2 }
 0x206   :  { %v1051_v60 = vadd.f32 %v1050_v61, %v1049_v19 }
 0x207   :  { %v1088_v11 = vadd.f32 %v1087_v48, %v1086_v55 }
 0x208   :  { %v1052_v40 = vrot.slane %v1051_v60, 1 }
 0x209   :  { %v1089_v49 = vrot.slane %v1088_v11, 1 }
 0x20a   :  { %v1053_v16 = vadd.f32 %v1052_v40, %v1051_v60 }
 0x20b   :  { %v1090_v1 = vadd.f32 %v1089_v49, %v1088_v11 }
 0x20d   :  { %v1103_v33 = vcombine.low %v1053_v16, %v1090_v1 }
 0x20f   :  { %v1110_v4 = vrot.slane %v1103_v33, %v1101_v7 }
 0x211   :  { %v1115_v45 = vrot.slane %v1110_v4, 7 }
 0x213   :  { %v1117_v43 = vsel %vm1116_vm2, %v1115_v45, %v1102_v57 }
 0x214   :  { %v1119_v18 = vsel %vm1118_vm3, %v1115_v45, %v1117_v43 }
 0x215   :  { %v1121_v10 = vsel %vm1120_vm4, %v1115_v45, %v1119_v18 }
 0x216   :  { %v1123_v9 = vsel %vm1122_vm5, %v1115_v45, %v1121_v10 }
 0x217   :  { %v1125_v5 = vadd.f32 %v1123_v9, %v942_v54 }
 0x219   :  { %1126 = vst [vmem:[#allocation2] sm:$0xf] %v1125_v5 }
 0x220   :  { %v1130_v21 = vld [vmem:[#allocation2] sm:$0xf] }
 0x221   :  { %v1131_v31 = vmul.f32 0.00390625, %v1130_v21 }
 0x223   :  { %v1139_v15 = vrot.slane %v1131_v31, %v1101_v7 }
 0x225   :  { %v1140_v12 = vcombine.high %v1139_v15, %v1139_v15  ;;  %v1143_v25 = vpack.c.bf16 %v1139_v15, %v1139_v15 }
 0x227   :  { %v1144_v35 = vpack.c.bf16 %v1140_v12, %v1140_v12 }
 0x229   :  { %1381 = vmatprep.mubr.bf16.mxu1 %v1144_v35 }
 0x22a   :  { %1382 = vmatmul.mubr.bf16.vlgmr.msra.gmra.mrb[60].mxu1 %v1143_v25 }
 0x2fd   :  { %v1383_v17 = vpop.f32.mrb[60].mxu1 }
 0x2fe   :  { %v1384_v28 = vadd.f32 %v1383_v17, %v1182_v29  ;;  %v1385_v3 = vpop.f32.mrb[61].mxu1 }
 0x2ff   :  { %v1386_v0 = vadd.f32 %v1385_v3, %v1186_v50  ;;  %v1387_v53 = vpop.f32.mrb[62].mxu1 }
 0x300   :  { %v1390_v46 = vmul.f32 %v1384_v28, %v1384_v28  ;;  %v1388_v63 = vpop.f32.mrb[63].mxu1 }
 0x301   :  { %v1391_v41 = vmul.f32 %v1386_v0, %v1386_v0 }
 0x302   :  { %v1392_v58 = vsel %vm454_vm0, %v1390_v46, 0.0 }
 0x303   :  { %v1393_v52 = vsel %vm454_vm0, %v1391_v41, 0.0 }
 0x304   :  { %v1394_v26 = vadd.f32 %v1393_v52, %v1392_v58 }
 0x306   :  { %1395 = vadd.xlane.f32.xlu0 %v1394_v26 }
 0x393   :  { %v1396_v32 = vpop.xlane.xlu0 %1395 }
 0x394   :  { %v1397_v62 = vmax.f32 %v1396_v32, 1e-24 }
 0x396   :  { %1652 = vrsqrt.f32 %v1397_v62 }
 0x3a0   :  { %v1653_v13 = vpop.eup %1652 }
 0x3a1   :  { %v1399_v37 = vmul.f32 %v1653_v13, %v1384_v28  ;;  %v1400_v23 = vmul.f32 %v1653_v13, %v1386_v0 }
 0x3a3   :  { %v1542_v51 = vpack.c.bf16 %v1400_v23, %v1399_v37 }
 0x3a5   :  { %v1412_v27 = vrot.slane %v1542_v51, %v1411_v36 }
 0x3a7   :  { %1543 = vst.sshfl [vmem:[#allocation12] sm:$0x5 pattern:$0x73625140] %v1412_v27 }
 0x3a8   :  { %1775 = shalt.err (!%p1772_p2)
}
 0x3a9   :  { %s1776_s30 = scalar_lea.hbm %s2319_s5, 32 }
 0x3aa   :  { %p1777_p3 = scmp.ne.s32.totalorder %s2319_s5, %s1776_s30  ;;  %p1780_p4 = scmp.lt.u32.totalorder %s1776_s30, %s2319_s5 }
 0x3ac   :  { %p1782_p5 = pnand %p1780_p4, %p1777_p3 }
 0x3ae   :  { %1785 = shalt.err (!%p1782_p5)
}
 0x3af   :  { %1431 = dma.vmem_to_hbm [thread:$0]  %s1429_s27, 32, %s2319_s5, [#allocation5]  }
 0x3b0   :  { %1792 = dma.done.wait [#allocation5], 32  }
 0x3b1   :  { %1793 = vsyncadd [#allocation5], 4294967264 }
 0x3b2   :  { %1435 = vsyncpa [#allocation4], 1 }
 0x3b3   :  { %1436 = vsyncpa [#allocation7], 1 }
 0x3b4   :  { %1437 = vsyncpa [#allocation10], 1 }
 0x3b5   :  { %1438 = vsyncpa [#allocation5], 1 }

</bundles_post_ra>
